<compile_context>
chip_gen: v5e
topology: v5e:2x2
jax: 0.10.0
libtpu: 0.0.40
codegen_flags: <defaults>
</compile_context>

<pallas_src>
import jax
import jax.numpy as jnp
from jax.experimental import pallas as pl
from jax.experimental.pallas import tpu as pltpu

EPS = 1e-5           # nn.InstanceNorm3d default
NEG_SLOPE = 0.01     # nn.LeakyReLU default


def _round_up(x, m):
    return ((x + m - 1) // m) * m


def _make_up_conv_kernel(cin_pad, c_out, hp, wp, l_out, n_valid_total):
    hw_p = hp * wp
    inv_count = 1.0 / float(n_valid_total)

    def kernel(x_ref, m_ref, w_ref, o_ref, stage_ref):
        # x_ref:     (1, cin_pad, sp_ext)   zero-padded ORIGINAL-res volume, flat
        # m_ref:     (1, l_out)             1.0 at valid per-phase positions
        # w_ref:     (8, c_out, 8*cin_pad)  per-phase fused tap weights
        # o_ref:     (1, 8, c_out, l_out)   phase-major, lane-dense output
        # stage_ref: (8*cin_pad, l_out)     staging for the fused-K matmul
        mask = m_ref[...]                                        # (1, L)

        s1 = jnp.zeros((c_out, 1), jnp.float32)
        s2 = jnp.zeros((c_out, 1), jnp.float32)

        for p in range(8):                      # output parity (pd, ph, pw)
            pd, ph, pw = (p >> 2) & 1, (p >> 1) & 1, p & 1
            # Pack the 8 combined taps (2x2x2 footprint on the original grid)
            # into the staging buffer; each tap is a static flat-offset window
            # of the padded original volume already resident in VMEM.
            for t in range(8):                  # tap (td, th, tw)
                td, th, tw = (t >> 2) & 1, (t >> 1) & 1, t & 1
                off = (pd + td) * hw_p + (ph + th) * wp + (pw + tw)
                stage_ref[pl.ds(t * cin_pad, cin_pad), :] = (
                    x_ref[0, :, pl.ds(off, l_out)])
            # One fused MXU matmul per phase: K = 8 * cin_pad.
            y = jnp.dot(w_ref[p], stage_ref[...],
                        preferred_element_type=jnp.float32)      # (c_out, L)
            ym = y * mask
            s1 = s1 + jnp.sum(ym, axis=1, keepdims=True)
            s2 = s2 + jnp.sum(ym * ym, axis=1, keepdims=True)
            o_ref[0, p] = y

        # InstanceNorm3d (affine=False): stats over all 8 phases' valid voxels.
        # TODO(synk): shifted / two-pass variance if cancellation shows up at
        # large volumes (needs the planned depth-slab tiling anyway).
        mean = s1 * inv_count
        var = jnp.maximum(s2 * inv_count - mean * mean, 0.0)
        inv_std = jax.lax.rsqrt(var + EPS)

        # Normalise + LeakyReLU in place on the resident output block.
        for p in range(8):
            yn = (o_ref[0, p] - mean) * inv_std
            o_ref[0, p] = jnp.where(yn >= 0, yn, NEG_SLOPE * yn)

    return kernel


def _pick_vmem_limit(resident_bytes):
    """Generation-aware VMEM budget: residency + headroom, clamped to ~85% of
    physical VMEM (64 MiB on v7x, 128 MiB on v5e/v6e)."""
    cap = 128 << 20
    try:
        cap = int(pltpu.get_tpu_info().vmem_capacity_bytes)
    except Exception:
        pass
    want = int(resident_bytes * 1.25) + (8 << 20)
    return int(max(32 << 20, min(want, int(cap * 0.85))))


def up_conv_forward(x, weight, bias=None):
    """x: (N, C_in, D, H, W) f32; weight: (C_out, C_in, 3, 3, 3).

    `bias` is accepted for API parity but unused: InstanceNorm (affine=False)
    subtracts the per-channel mean immediately after the conv, so a per-channel
    bias is exactly cancelled.
    """
    del bias
    n, c_in, d, h, w = x.shape
    c_out = weight.shape[0]
    dp, hp, wp = d + 2, h + 2, w + 2
    hw_p = hp * wp
    sp = dp * hw_p

    cin_pad = _round_up(c_in, 8)                 # sublane-aligned tap slabs
    l_out = _round_up(d * hw_p, 128)             # lane-dense per-phase length
    max_off = 2 * hw_p + 2 * wp + 2              # largest tap flat offset
    sp_ext = _round_up(max_off + l_out, 128)

    # ---- wrapper glue: zero-pad the ORIGINAL-resolution volume by 1 and
    # flatten; the 2x-upsampled volume is never materialised (polyphase fold).
    x_pad = jnp.pad(x.astype(jnp.float32),
                    ((0, 0), (0, cin_pad - c_in), (1, 1), (1, 1), (1, 1)))
    x_flat = jnp.pad(x_pad.reshape(n, cin_pad, sp),
                     ((0, 0), (0, 0), (0, sp_ext - sp)))

    # Validity mask for the padded-stride / lane-rounded garbage columns.
    # TODO(synk): build in-kernel from broadcasted_iota once vector int div/mod
    # lowering is verified; as an HBM stream it is only d*hp*wp*4 bytes now.
    mask3 = jnp.zeros((d, hp, wp), jnp.float32).at[:, :h, :w].set(1.0)
    mask = jnp.pad(mask3.reshape(-1), (0, l_out - d * hw_p)).reshape(1, l_out)

    # ---- polyphase weight combine (per axis): for output parity p, tap t:
    #   p=0: t=0 -> W[0],      t=1 -> W[1]+W[2]
    #   p=1: t=0 -> W[0]+W[1], t=1 -> W[2]
    sel = jnp.array([[[1., 0., 0.], [0., 1., 1.]],
                     [[1., 1., 0.], [0., 0., 1.]]], jnp.float32)  # (phase,tap,k)
    wc = jnp.einsum('adk,bel,cfm,oiklm->abcdefoi',
                    sel, sel, sel, weight.astype(jnp.float32),
                    precision=jax.lax.Precision.HIGHEST)
    # (pd,ph,pw, td,th,tw, o, i) -> (pd,ph,pw, o, td,th,tw, i), pad i -> cin_pad
    wc = wc.transpose(0, 1, 2, 6, 3, 4, 5, 7)
    wc = jnp.pad(wc, ((0, 0),) * 7 + ((0, cin_pad - c_in),))
    w_fused = wc.reshape(8, c_out, 8 * cin_pad)

    kernel = _make_up_conv_kernel(cin_pad, c_out, hp, wp, l_out, 8 * d * h * w)

    in_blk = 4 * cin_pad * sp_ext
    out_blk = 4 * 8 * c_out * l_out
    stage = 4 * 8 * cin_pad * l_out
    wts = 4 * 8 * c_out * 8 * cin_pad
    temps = 4 * 4 * c_out * l_out
    resident = 2 * in_blk + 2 * out_blk + stage + 2 * wts + 2 * 4 * l_out + temps
    vmem_limit = _pick_vmem_limit(resident)

    # TODO(synk): for volumes whose per-batch residency exceeds the budget
    # (>~48^3 on v7x's 64 MiB), add a depth-slab grid axis (marked "parallel",
    # also feeds v7x's 2nd TensorCore when N is small) with two-pass
    # InstanceNorm; for tiny volumes, batch several N per grid step.
    out_flat = pl.pallas_call(
        kernel,
        out_shape=jax.ShapeDtypeStruct((n, 8, c_out, l_out), jnp.float32),
        grid_spec=pltpu.PrefetchScalarGridSpec(
            num_scalar_prefetch=0,
            grid=(n,),
            in_specs=[
                pl.BlockSpec((1, cin_pad, sp_ext), lambda i: (i, 0, 0)),
                pl.BlockSpec((1, l_out), lambda i: (0, 0)),
                pl.BlockSpec((8, c_out, 8 * cin_pad), lambda i: (0, 0, 0)),
            ],
            out_specs=pl.BlockSpec((1, 8, c_out, l_out), lambda i: (i, 0, 0, 0)),
            scratch_shapes=[pltpu.VMEM((8 * cin_pad, l_out), jnp.float32)],
        ),
        compiler_params=pltpu.CompilerParams(
            dimension_semantics=("parallel",),
            vmem_limit_bytes=vmem_limit),
    )(x_flat, mask, w_fused)

    # Phase-major -> NCDHW: one fused XLA slice+transpose+reshape of the output.
    # TODO(synk): interleave the h/w phases in-kernel and emit depth-slab output
    # blocks so this copy (one output HBM round trip) disappears entirely.
    # TODO(synk): optionally cast x / fused weights to bf16 (keep f32
    # accumulation and InstanceNorm math) after re-validating tolerance.
    out6 = out_flat[:, :, :, :d * hw_p].reshape(n, 2, 2, 2, c_out, d, hp, wp)
    out6 = out6[:, :, :, :, :, :, :h, :w]           # (n, pd, ph, pw, c, di, hi, wi)
    out = out6.transpose(0, 4, 5, 1, 6, 2, 7, 3)    # (n, c, di, pd, hi, ph, wi, pw)
    return out.reshape(n, c_out, 2 * d, 2 * h, 2 * w)


def up_conv_reference(x, weight, bias):
    """Pure-JAX reference mirroring the PyTorch module (bias included)."""
    x_up = jnp.repeat(jnp.repeat(jnp.repeat(x, 2, axis=2), 2, axis=3), 2, axis=4)
    y = jax.lax.conv_general_dilated(
        x_up, weight, window_strides=(1, 1, 1), padding="SAME",
        dimension_numbers=("NCDHW", "OIDHW", "NCDHW"))
    y = y + bias.reshape(1, -1, 1, 1, 1)
    mean = jnp.mean(y, axis=(2, 3, 4), keepdims=True)
    var = jnp.mean((y - mean) ** 2, axis=(2, 3, 4), keepdims=True)
    y = (y - mean) * jax.lax.rsqrt(var + EPS)
    return jnp.where(y >= 0, y, NEG_SLOPE * y)


if __name__ == "__main__":
    key = jax.random.PRNGKey(0)
    k_x, k_w, k_b = jax.random.split(key, 3)

    batch, ch_in, ch_out = 2, 4, 8
    d = h = w = 4  # upsampled to 8x8x8

    x = jax.random.normal(k_x, (batch, ch_in, d, h, w), dtype=jnp.float32)
    fan_in = ch_in * 27
    bound = 1.0 / (fan_in ** 0.5)
    weight = jax.random.uniform(k_w, (ch_out, ch_in, 3, 3, 3),
                                minval=-bound, maxval=bound, dtype=jnp.float32)
    bias = jax.random.uniform(k_b, (ch_out,), minval=-bound, maxval=bound,
                              dtype=jnp.float32)

    out = jax.jit(up_conv_forward)(x, weight, bias)
    out = jax.block_until_ready(out)

    ref = up_conv_reference(x, weight, bias)
    assert out.shape == (batch, ch_out, 2 * d, 2 * h, 2 * w)
    assert jnp.allclose(out, ref, atol=1e-4, rtol=1e-4)

    print("KERNEL_OK")
</pallas_src>

<mosaic_0001>
module attributes {stable_mosaic.version = 11 : i64} {
  func.func @kernel(%arg0: i32, %arg1: memref<1x8x384xf32, #tpu.memory_space<vmem>>, %arg2: memref<1x256xf32, #tpu.memory_space<vmem>>, %arg3: memref<8x8x64xf32, #tpu.memory_space<vmem>>, %arg4: memref<1x8x8x256xf32, #tpu.memory_space<vmem>>, %arg5: memref<64x256xf32, #tpu.memory_space<vmem>>) attributes {dimension_semantics = [#tpu.dimension_semantics<parallel>], iteration_bounds = array<i64: 2>, scalar_prefetch = 0 : i64, scratch_operands = 1 : i64, tpu.core_type = #tpu.core_type<tc>, window_params = [{transform_indices = @transform_0, window_bounds = array<i64: 1, 8, 384>}, {pipeline_mode = #tpu.pipeline_mode<synchronous>, transform_indices = @transform_1, window_bounds = array<i64: 1, 256>}, {pipeline_mode = #tpu.pipeline_mode<synchronous>, transform_indices = @transform_2, window_bounds = array<i64: 8, 8, 64>}, {transform_indices = @transform_3, window_bounds = array<i64: 1, 8, 8, 256>}]} {
    %c0 = arith.constant 0 : index
    %c0_0 = arith.constant 0 : index
    %0 = vector.load %arg2[%c0, %c0_0] : memref<1x256xf32, #tpu.memory_space<vmem>>, vector<1x256xf32>
    %cst = arith.constant 0.000000e+00 : f32
    %1 = vector.broadcast %cst : f32 to vector<8x1xf32>
    %cst_1 = arith.constant 0.000000e+00 : f32
    %2 = vector.broadcast %cst_1 : f32 to vector<8x1xf32>
    %c0_2 = arith.constant 0 : index
    %c0_3 = arith.constant 0 : index
    %c0_4 = arith.constant 0 : index
    %3 = vector.load %arg1[%c0_2, %c0_3, %c0_4] : memref<1x8x384xf32, #tpu.memory_space<vmem>>, vector<1x8x256xf32>
    %4 = vector.shape_cast %3 : vector<1x8x256xf32> to vector<8x256xf32>
    %c0_5 = arith.constant 0 : index
    %c0_6 = arith.constant 0 : index
    %5 = vector.load %arg5[%c0_5, %c0_6] : memref<64x256xf32, #tpu.memory_space<vmem>>, vector<8x256xf32>
    tpu.vector_store %arg5[%c0_5, %c0_6], %4 {strides = array<i32>} : memref<64x256xf32, #tpu.memory_space<vmem>>, vector<8x256xf32>,
    %c0_7 = arith.constant 0 : index
    %c0_8 = arith.constant 0 : index
    %c1 = arith.constant 1 : index
    %6 = vector.load %arg1[%c0_7, %c0_8, %c1] : memref<1x8x384xf32, #tpu.memory_space<vmem>>, vector<1x8x256xf32>
    %7 = vector.shape_cast %6 : vector<1x8x256xf32> to vector<8x256xf32>
    %c8 = arith.constant 8 : index
    %c0_9 = arith.constant 0 : index
    %8 = vector.load %arg5[%c8, %c0_9] : memref<64x256xf32, #tpu.memory_space<vmem>>, vector<8x256xf32>
    tpu.vector_store %arg5[%c8, %c0_9], %7 {strides = array<i32>} : memref<64x256xf32, #tpu.memory_space<vmem>>, vector<8x256xf32>,
    %c0_10 = arith.constant 0 : index
    %c0_11 = arith.constant 0 : index
    %c6 = arith.constant 6 : index
    %9 = vector.load %arg1[%c0_10, %c0_11, %c6] : memref<1x8x384xf32, #tpu.memory_space<vmem>>, vector<1x8x256xf32>
    %10 = vector.shape_cast %9 : vector<1x8x256xf32> to vector<8x256xf32>
    %c16 = arith.constant 16 : index
    %c0_12 = arith.constant 0 : index
    %11 = vector.load %arg5[%c16, %c0_12] : memref<64x256xf32, #tpu.memory_space<vmem>>, vector<8x256xf32>
    tpu.vector_store %arg5[%c16, %c0_12], %10 {strides = array<i32>} : memref<64x256xf32, #tpu.memory_space<vmem>>, vector<8x256xf32>,
    %c0_13 = arith.constant 0 : index
    %c0_14 = arith.constant 0 : index
    %c7 = arith.constant 7 : index
    %12 = vector.load %arg1[%c0_13, %c0_14, %c7] : memref<1x8x384xf32, #tpu.memory_space<vmem>>, vector<1x8x256xf32>
    %13 = vector.shape_cast %12 : vector<1x8x256xf32> to vector<8x256xf32>
    %c24 = arith.constant 24 : index
    %c0_15 = arith.constant 0 : index
    %14 = vector.load %arg5[%c24, %c0_15] : memref<64x256xf32, #tpu.memory_space<vmem>>, vector<8x256xf32>
    tpu.vector_store %arg5[%c24, %c0_15], %13 {strides = array<i32>} : memref<64x256xf32, #tpu.memory_space<vmem>>, vector<8x256xf32>,
    %c0_16 = arith.constant 0 : index
    %c0_17 = arith.constant 0 : index
    %c36 = arith.constant 36 : index
    %15 = vector.load %arg1[%c0_16, %c0_17, %c36] : memref<1x8x384xf32, #tpu.memory_space<vmem>>, vector<1x8x256xf32>
    %16 = vector.shape_cast %15 : vector<1x8x256xf32> to vector<8x256xf32>
    %c32 = arith.constant 32 : index
    %c0_18 = arith.constant 0 : index
    %17 = vector.load %arg5[%c32, %c0_18] : memref<64x256xf32, #tpu.memory_space<vmem>>, vector<8x256xf32>
    tpu.vector_store %arg5[%c32, %c0_18], %16 {strides = array<i32>} : memref<64x256xf32, #tpu.memory_space<vmem>>, vector<8x256xf32>,
    %c0_19 = arith.constant 0 : index
    %c0_20 = arith.constant 0 : index
    %c37 = arith.constant 37 : index
    %18 = vector.load %arg1[%c0_19, %c0_20, %c37] : memref<1x8x384xf32, #tpu.memory_space<vmem>>, vector<1x8x256xf32>
    %19 = vector.shape_cast %18 : vector<1x8x256xf32> to vector<8x256xf32>
    %c40 = arith.constant 40 : index
    %c0_21 = arith.constant 0 : index
    %20 = vector.load %arg5[%c40, %c0_21] : memref<64x256xf32, #tpu.memory_space<vmem>>, vector<8x256xf32>
    tpu.vector_store %arg5[%c40, %c0_21], %19 {strides = array<i32>} : memref<64x256xf32, #tpu.memory_space<vmem>>, vector<8x256xf32>,
    %c0_22 = arith.constant 0 : index
    %c0_23 = arith.constant 0 : index
    %c42 = arith.constant 42 : index
    %21 = vector.load %arg1[%c0_22, %c0_23, %c42] : memref<1x8x384xf32, #tpu.memory_space<vmem>>, vector<1x8x256xf32>
    %22 = vector.shape_cast %21 : vector<1x8x256xf32> to vector<8x256xf32>
    %c48 = arith.constant 48 : index
    %c0_24 = arith.constant 0 : index
    %23 = vector.load %arg5[%c48, %c0_24] : memref<64x256xf32, #tpu.memory_space<vmem>>, vector<8x256xf32>
    tpu.vector_store %arg5[%c48, %c0_24], %22 {strides = array<i32>} : memref<64x256xf32, #tpu.memory_space<vmem>>, vector<8x256xf32>,
    %c0_25 = arith.constant 0 : index
    %c0_26 = arith.constant 0 : index
    %c43 = arith.constant 43 : index
    %24 = vector.load %arg1[%c0_25, %c0_26, %c43] : memref<1x8x384xf32, #tpu.memory_space<vmem>>, vector<1x8x256xf32>
    %25 = vector.shape_cast %24 : vector<1x8x256xf32> to vector<8x256xf32>
    %c56 = arith.constant 56 : index
    %c0_27 = arith.constant 0 : index
    %26 = vector.load %arg5[%c56, %c0_27] : memref<64x256xf32, #tpu.memory_space<vmem>>, vector<8x256xf32>
    tpu.vector_store %arg5[%c56, %c0_27], %25 {strides = array<i32>} : memref<64x256xf32, #tpu.memory_space<vmem>>, vector<8x256xf32>,
    %c0_28 = arith.constant 0 : index
    %c0_29 = arith.constant 0 : index
    %c0_30 = arith.constant 0 : index
    %27 = vector.load %arg3[%c0_28, %c0_29, %c0_30] : memref<8x8x64xf32, #tpu.memory_space<vmem>>, vector<1x8x64xf32>
    %28 = vector.shape_cast %27 : vector<1x8x64xf32> to vector<8x64xf32>
    %c0_31 = arith.constant 0 : index
    %c0_32 = arith.constant 0 : index
    %29 = vector.load %arg5[%c0_31, %c0_32] : memref<64x256xf32, #tpu.memory_space<vmem>>, vector<64x256xf32>
    %cst_33 = arith.constant dense<0.000000e+00> : vector<8x256xf32>
    %30 = tpu.matmul %28, %29, %cst_33 {dimension_numbers = #tpu.dot_dimension_numbers<[1], [0], [0], [1], [0, 0, 1, 1], [], []>} : vector<8x64xf32>, vector<64x256xf32>, vector<8x256xf32> -> vector<8x256xf32>
    %31 = vector.broadcast %0 : vector<1x256xf32> to vector<8x256xf32>
    %32 = arith.mulf %30, %31 : vector<8x256xf32>
    %cst_34 = arith.constant dense<0.000000e+00> : vector<8xf32>
    %33 = vector.multi_reduction <add>, %32, %cst_34 [1] : vector<8x256xf32> to vector<8xf32>
    %34 = vector.shape_cast %33 : vector<8xf32> to vector<8x1xf32>
    %35 = arith.addf %1, %34 : vector<8x1xf32>
    %36 = arith.mulf %32, %32 : vector<8x256xf32>
    %cst_35 = arith.constant dense<0.000000e+00> : vector<8xf32>
    %37 = vector.multi_reduction <add>, %36, %cst_35 [1] : vector<8x256xf32> to vector<8xf32>
    %38 = vector.shape_cast %37 : vector<8xf32> to vector<8x1xf32>
    %39 = arith.addf %2, %38 : vector<8x1xf32>
    %c0_36 = arith.constant 0 : index
    %c0_37 = arith.constant 0 : index
    %c0_38 = arith.constant 0 : index
    %c0_39 = arith.constant 0 : index
    %40 = vector.load %arg4[%c0_36, %c0_37, %c0_38, %c0_39] : memref<1x8x8x256xf32, #tpu.memory_space<vmem>>, vector<1x1x8x256xf32>
    %41 = vector.shape_cast %40 : vector<1x1x8x256xf32> to vector<8x256xf32>
    %42 = vector.shape_cast %30 : vector<8x256xf32> to vector<1x1x8x256xf32>
    tpu.vector_store %arg4[%c0_36, %c0_37, %c0_38, %c0_39], %42 {strides = array<i32>} : memref<1x8x8x256xf32, #tpu.memory_space<vmem>>, vector<1x1x8x256xf32>,
    %c0_40 = arith.constant 0 : index
    %c0_41 = arith.constant 0 : index
    %c1_42 = arith.constant 1 : index
    %43 = vector.load %arg1[%c0_40, %c0_41, %c1_42] : memref<1x8x384xf32, #tpu.memory_space<vmem>>, vector<1x8x256xf32>
    %44 = vector.shape_cast %43 : vector<1x8x256xf32> to vector<8x256xf32>
    %c0_43 = arith.constant 0 : index
    %c0_44 = arith.constant 0 : index
    %45 = vector.load %arg5[%c0_43, %c0_44] : memref<64x256xf32, #tpu.memory_space<vmem>>, vector<8x256xf32>
    tpu.vector_store %arg5[%c0_43, %c0_44], %44 {strides = array<i32>} : memref<64x256xf32, #tpu.memory_space<vmem>>, vector<8x256xf32>,
    %c0_45 = arith.constant 0 : index
    %c0_46 = arith.constant 0 : index
    %c2 = arith.constant 2 : index
    %46 = vector.load %arg1[%c0_45, %c0_46, %c2] : memref<1x8x384xf32, #tpu.memory_space<vmem>>, vector<1x8x256xf32>
    %47 = vector.shape_cast %46 : vector<1x8x256xf32> to vector<8x256xf32>
    %c8_47 = arith.constant 8 : index
    %c0_48 = arith.constant 0 : index
    %48 = vector.load %arg5[%c8_47, %c0_48] : memref<64x256xf32, #tpu.memory_space<vmem>>, vector<8x256xf32>
    tpu.vector_store %arg5[%c8_47, %c0_48], %47 {strides = array<i32>} : memref<64x256xf32, #tpu.memory_space<vmem>>, vector<8x256xf32>,
    %c0_49 = arith.constant 0 : index
    %c0_50 = arith.constant 0 : index
    %c7_51 = arith.constant 7 : index
    %49 = vector.load %arg1[%c0_49, %c0_50, %c7_51] : memref<1x8x384xf32, #tpu.memory_space<vmem>>, vector<1x8x256xf32>
    %50 = vector.shape_cast %49 : vector<1x8x256xf32> to vector<8x256xf32>
    %c16_52 = arith.constant 16 : index
    %c0_53 = arith.constant 0 : index
    %51 = vector.load %arg5[%c16_52, %c0_53] : memref<64x256xf32, #tpu.memory_space<vmem>>, vector<8x256xf32>
    tpu.vector_store %arg5[%c16_52, %c0_53], %50 {strides = array<i32>} : memref<64x256xf32, #tpu.memory_space<vmem>>, vector<8x256xf32>,
    %c0_54 = arith.constant 0 : index
    %c0_55 = arith.constant 0 : index
    %c8_56 = arith.constant 8 : index
    %52 = vector.load %arg1[%c0_54, %c0_55, %c8_56] : memref<1x8x384xf32, #tpu.memory_space<vmem>>, vector<1x8x256xf32>
    %53 = vector.shape_cast %52 : vector<1x8x256xf32> to vector<8x256xf32>
    %c24_57 = arith.constant 24 : index
    %c0_58 = arith.constant 0 : index
    %54 = vector.load %arg5[%c24_57, %c0_58] : memref<64x256xf32, #tpu.memory_space<vmem>>, vector<8x256xf32>
    tpu.vector_store %arg5[%c24_57, %c0_58], %53 {strides = array<i32>} : memref<64x256xf32, #tpu.memory_space<vmem>>, vector<8x256xf32>,
    %c0_59 = arith.constant 0 : index
    %c0_60 = arith.constant 0 : index
    %c37_61 = arith.constant 37 : index
    %55 = vector.load %arg1[%c0_59, %c0_60, %c37_61] : memref<1x8x384xf32, #tpu.memory_space<vmem>>, vector<1x8x256xf32>
    %56 = vector.shape_cast %55 : vector<1x8x256xf32> to vector<8x256xf32>
    %c32_62 = arith.constant 32 : index
    %c0_63 = arith.constant 0 : index
    %57 = vector.load %arg5[%c32_62, %c0_63] : memref<64x256xf32, #tpu.memory_space<vmem>>, vector<8x256xf32>
    tpu.vector_store %arg5[%c32_62, %c0_63], %56 {strides = array<i32>} : memref<64x256xf32, #tpu.memory_space<vmem>>, vector<8x256xf32>,
    %c0_64 = arith.constant 0 : index
    %c0_65 = arith.constant 0 : index
    %c38 = arith.constant 38 : index
    %58 = vector.load %arg1[%c0_64, %c0_65, %c38] : memref<1x8x384xf32, #tpu.memory_space<vmem>>, vector<1x8x256xf32>
    %59 = vector.shape_cast %58 : vector<1x8x256xf32> to vector<8x256xf32>
    %c40_66 = arith.constant 40 : index
    %c0_67 = arith.constant 0 : index
    %60 = vector.load %arg5[%c40_66, %c0_67] : memref<64x256xf32, #tpu.memory_space<vmem>>, vector<8x256xf32>
    tpu.vector_store %arg5[%c40_66, %c0_67], %59 {strides = array<i32>} : memref<64x256xf32, #tpu.memory_space<vmem>>, vector<8x256xf32>,
    %c0_68 = arith.constant 0 : index
    %c0_69 = arith.constant 0 : index
    %c43_70 = arith.constant 43 : index
    %61 = vector.load %arg1[%c0_68, %c0_69, %c43_70] : memref<1x8x384xf32, #tpu.memory_space<vmem>>, vector<1x8x256xf32>
    %62 = vector.shape_cast %61 : vector<1x8x256xf32> to vector<8x256xf32>
    %c48_71 = arith.constant 48 : index
    %c0_72 = arith.constant 0 : index
    %63 = vector.load %arg5[%c48_71, %c0_72] : memref<64x256xf32, #tpu.memory_space<vmem>>, vector<8x256xf32>
    tpu.vector_store %arg5[%c48_71, %c0_72], %62 {strides = array<i32>} : memref<64x256xf32, #tpu.memory_space<vmem>>, vector<8x256xf32>,
    %c0_73 = arith.constant 0 : index
    %c0_74 = arith.constant 0 : index
    %c44 = arith.constant 44 : index
    %64 = vector.load %arg1[%c0_73, %c0_74, %c44] : memref<1x8x384xf32, #tpu.memory_space<vmem>>, vector<1x8x256xf32>
    %65 = vector.shape_cast %64 : vector<1x8x256xf32> to vector<8x256xf32>
    %c56_75 = arith.constant 56 : index
    %c0_76 = arith.constant 0 : index
    %66 = vector.load %arg5[%c56_75, %c0_76] : memref<64x256xf32, #tpu.memory_space<vmem>>, vector<8x256xf32>
    tpu.vector_store %arg5[%c56_75, %c0_76], %65 {strides = array<i32>} : memref<64x256xf32, #tpu.memory_space<vmem>>, vector<8x256xf32>,
    %c1_77 = arith.constant 1 : index
    %c0_78 = arith.constant 0 : index
    %c0_79 = arith.constant 0 : index
    %67 = vector.load %arg3[%c1_77, %c0_78, %c0_79] : memref<8x8x64xf32, #tpu.memory_space<vmem>>, vector<1x8x64xf32>
    %68 = vector.shape_cast %67 : vector<1x8x64xf32> to vector<8x64xf32>
    %c0_80 = arith.constant 0 : index
    %c0_81 = arith.constant 0 : index
    %69 = vector.load %arg5[%c0_80, %c0_81] : memref<64x256xf32, #tpu.memory_space<vmem>>, vector<64x256xf32>
    %cst_82 = arith.constant dense<0.000000e+00> : vector<8x256xf32>
    %70 = tpu.matmul %68, %69, %cst_82 {dimension_numbers = #tpu.dot_dimension_numbers<[1], [0], [0], [1], [0, 0, 1, 1], [], []>} : vector<8x64xf32>, vector<64x256xf32>, vector<8x256xf32> -> vector<8x256xf32>
    %71 = vector.broadcast %0 : vector<1x256xf32> to vector<8x256xf32>
    %72 = arith.mulf %70, %71 : vector<8x256xf32>
    %cst_83 = arith.constant dense<0.000000e+00> : vector<8xf32>
    %73 = vector.multi_reduction <add>, %72, %cst_83 [1] : vector<8x256xf32> to vector<8xf32>
    %74 = vector.shape_cast %73 : vector<8xf32> to vector<8x1xf32>
    %75 = arith.addf %35, %74 : vector<8x1xf32>
    %76 = arith.mulf %72, %72 : vector<8x256xf32>
    %cst_84 = arith.constant dense<0.000000e+00> : vector<8xf32>
    %77 = vector.multi_reduction <add>, %76, %cst_84 [1] : vector<8x256xf32> to vector<8xf32>
    %78 = vector.shape_cast %77 : vector<8xf32> to vector<8x1xf32>
    %79 = arith.addf %39, %78 : vector<8x1xf32>
    %c0_85 = arith.constant 0 : index
    %c1_86 = arith.constant 1 : index
    %c0_87 = arith.constant 0 : index
    %c0_88 = arith.constant 0 : index
    %80 = vector.load %arg4[%c0_85, %c1_86, %c0_87, %c0_88] : memref<1x8x8x256xf32, #tpu.memory_space<vmem>>, vector<1x1x8x256xf32>
    %81 = vector.shape_cast %80 : vector<1x1x8x256xf32> to vector<8x256xf32>
    %82 = vector.shape_cast %70 : vector<8x256xf32> to vector<1x1x8x256xf32>
    tpu.vector_store %arg4[%c0_85, %c1_86, %c0_87, %c0_88], %82 {strides = array<i32>} : memref<1x8x8x256xf32, #tpu.memory_space<vmem>>, vector<1x1x8x256xf32>,
    %c0_89 = arith.constant 0 : index
    %c0_90 = arith.constant 0 : index
    %c6_91 = arith.constant 6 : index
    %83 = vector.load %arg1[%c0_89, %c0_90, %c6_91] : memref<1x8x384xf32, #tpu.memory_space<vmem>>, vector<1x8x256xf32>
    %84 = vector.shape_cast %83 : vector<1x8x256xf32> to vector<8x256xf32>
    %c0_92 = arith.constant 0 : index
    %c0_93 = arith.constant 0 : index
    %85 = vector.load %arg5[%c0_92, %c0_93] : memref<64x256xf32, #tpu.memory_space<vmem>>, vector<8x256xf32>
    tpu.vector_store %arg5[%c0_92, %c0_93], %84 {strides = array<i32>} : memref<64x256xf32, #tpu.memory_space<vmem>>, vector<8x256xf32>,
    %c0_94 = arith.constant 0 : index
    %c0_95 = arith.constant 0 : index
    %c7_96 = arith.constant 7 : index
    %86 = vector.load %arg1[%c0_94, %c0_95, %c7_96] : memref<1x8x384xf32, #tpu.memory_space<vmem>>, vector<1x8x256xf32>
    %87 = vector.shape_cast %86 : vector<1x8x256xf32> to vector<8x256xf32>
    %c8_97 = arith.constant 8 : index
    %c0_98 = arith.constant 0 : index
    %88 = vector.load %arg5[%c8_97, %c0_98] : memref<64x256xf32, #tpu.memory_space<vmem>>, vector<8x256xf32>
    tpu.vector_store %arg5[%c8_97, %c0_98], %87 {strides = array<i32>} : memref<64x256xf32, #tpu.memory_space<vmem>>, vector<8x256xf32>,
    %c0_99 = arith.constant 0 : index
    %c0_100 = arith.constant 0 : index
    %c12 = arith.constant 12 : index
    %89 = vector.load %arg1[%c0_99, %c0_100, %c12] : memref<1x8x384xf32, #tpu.memory_space<vmem>>, vector<1x8x256xf32>
    %90 = vector.shape_cast %89 : vector<1x8x256xf32> to vector<8x256xf32>
    %c16_101 = arith.constant 16 : index
    %c0_102 = arith.constant 0 : index
    %91 = vector.load %arg5[%c16_101, %c0_102] : memref<64x256xf32, #tpu.memory_space<vmem>>, vector<8x256xf32>
    tpu.vector_store %arg5[%c16_101, %c0_102], %90 {strides = array<i32>} : memref<64x256xf32, #tpu.memory_space<vmem>>, vector<8x256xf32>,
    %c0_103 = arith.constant 0 : index
    %c0_104 = arith.constant 0 : index
    %c13 = arith.constant 13 : index
    %92 = vector.load %arg1[%c0_103, %c0_104, %c13] : memref<1x8x384xf32, #tpu.memory_space<vmem>>, vector<1x8x256xf32>
    %93 = vector.shape_cast %92 : vector<1x8x256xf32> to vector<8x256xf32>
    %c24_105 = arith.constant 24 : index
    %c0_106 = arith.constant 0 : index
    %94 = vector.load %arg5[%c24_105, %c0_106] : memref<64x256xf32, #tpu.memory_space<vmem>>, vector<8x256xf32>
    tpu.vector_store %arg5[%c24_105, %c0_106], %93 {strides = array<i32>} : memref<64x256xf32, #tpu.memory_space<vmem>>, vector<8x256xf32>,
    %c0_107 = arith.constant 0 : index
    %c0_108 = arith.constant 0 : index
    %c42_109 = arith.constant 42 : index
    %95 = vector.load %arg1[%c0_107, %c0_108, %c42_109] : memref<1x8x384xf32, #tpu.memory_space<vmem>>, vector<1x8x256xf32>
    %96 = vector.shape_cast %95 : vector<1x8x256xf32> to vector<8x256xf32>
    %c32_110 = arith.constant 32 : index
    %c0_111 = arith.constant 0 : index
    %97 = vector.load %arg5[%c32_110, %c0_111] : memref<64x256xf32, #tpu.memory_space<vmem>>, vector<8x256xf32>
    tpu.vector_store %arg5[%c32_110, %c0_111], %96 {strides = array<i32>} : memref<64x256xf32, #tpu.memory_space<vmem>>, vector<8x256xf32>,
    %c0_112 = arith.constant 0 : index
    %c0_113 = arith.constant 0 : index
    %c43_114 = arith.constant 43 : index
    %98 = vector.load %arg1[%c0_112, %c0_113, %c43_114] : memref<1x8x384xf32, #tpu.memory_space<vmem>>, vector<1x8x256xf32>
    %99 = vector.shape_cast %98 : vector<1x8x256xf32> to vector<8x256xf32>
    %c40_115 = arith.constant 40 : index
    %c0_116 = arith.constant 0 : index
    %100 = vector.load %arg5[%c40_115, %c0_116] : memref<64x256xf32, #tpu.memory_space<vmem>>, vector<8x256xf32>
    tpu.vector_store %arg5[%c40_115, %c0_116], %99 {strides = array<i32>} : memref<64x256xf32, #tpu.memory_space<vmem>>, vector<8x256xf32>,
    %c0_117 = arith.constant 0 : index
    %c0_118 = arith.constant 0 : index
    %c48_119 = arith.constant 48 : index
    %101 = vector.load %arg1[%c0_117, %c0_118, %c48_119] : memref<1x8x384xf32, #tpu.memory_space<vmem>>, vector<1x8x256xf32>
    %102 = vector.shape_cast %101 : vector<1x8x256xf32> to vector<8x256xf32>
    %c48_120 = arith.constant 48 : index
    %c0_121 = arith.constant 0 : index
    %103 = vector.load %arg5[%c48_120, %c0_121] : memref<64x256xf32, #tpu.memory_space<vmem>>, vector<8x256xf32>
    tpu.vector_store %arg5[%c48_120, %c0_121], %102 {strides = array<i32>} : memref<64x256xf32, #tpu.memory_space<vmem>>, vector<8x256xf32>,
    %c0_122 = arith.constant 0 : index
    %c0_123 = arith.constant 0 : index
    %c49 = arith.constant 49 : index
    %104 = vector.load %arg1[%c0_122, %c0_123, %c49] : memref<1x8x384xf32, #tpu.memory_space<vmem>>, vector<1x8x256xf32>
    %105 = vector.shape_cast %104 : vector<1x8x256xf32> to vector<8x256xf32>
    %c56_124 = arith.constant 56 : index
    %c0_125 = arith.constant 0 : index
    %106 = vector.load %arg5[%c56_124, %c0_125] : memref<64x256xf32, #tpu.memory_space<vmem>>, vector<8x256xf32>
    tpu.vector_store %arg5[%c56_124, %c0_125], %105 {strides = array<i32>} : memref<64x256xf32, #tpu.memory_space<vmem>>, vector<8x256xf32>,
    %c2_126 = arith.constant 2 : index
    %c0_127 = arith.constant 0 : index
    %c0_128 = arith.constant 0 : index
    %107 = vector.load %arg3[%c2_126, %c0_127, %c0_128] : memref<8x8x64xf32, #tpu.memory_space<vmem>>, vector<1x8x64xf32>
    %108 = vector.shape_cast %107 : vector<1x8x64xf32> to vector<8x64xf32>
    %c0_129 = arith.constant 0 : index
    %c0_130 = arith.constant 0 : index
    %109 = vector.load %arg5[%c0_129, %c0_130] : memref<64x256xf32, #tpu.memory_space<vmem>>, vector<64x256xf32>
    %cst_131 = arith.constant dense<0.000000e+00> : vector<8x256xf32>
    %110 = tpu.matmul %108, %109, %cst_131 {dimension_numbers = #tpu.dot_dimension_numbers<[1], [0], [0], [1], [0, 0, 1, 1], [], []>} : vector<8x64xf32>, vector<64x256xf32>, vector<8x256xf32> -> vector<8x256xf32>
    %111 = vector.broadcast %0 : vector<1x256xf32> to vector<8x256xf32>
    %112 = arith.mulf %110, %111 : vector<8x256xf32>
    %cst_132 = arith.constant dense<0.000000e+00> : vector<8xf32>
    %113 = vector.multi_reduction <add>, %112, %cst_132 [1] : vector<8x256xf32> to vector<8xf32>
    %114 = vector.shape_cast %113 : vector<8xf32> to vector<8x1xf32>
    %115 = arith.addf %75, %114 : vector<8x1xf32>
    %116 = arith.mulf %112, %112 : vector<8x256xf32>
    %cst_133 = arith.constant dense<0.000000e+00> : vector<8xf32>
    %117 = vector.multi_reduction <add>, %116, %cst_133 [1] : vector<8x256xf32> to vector<8xf32>
    %118 = vector.shape_cast %117 : vector<8xf32> to vector<8x1xf32>
    %119 = arith.addf %79, %118 : vector<8x1xf32>
    %c0_134 = arith.constant 0 : index
    %c2_135 = arith.constant 2 : index
    %c0_136 = arith.constant 0 : index
    %c0_137 = arith.constant 0 : index
    %120 = vector.load %arg4[%c0_134, %c2_135, %c0_136, %c0_137] : memref<1x8x8x256xf32, #tpu.memory_space<vmem>>, vector<1x1x8x256xf32>
    %121 = vector.shape_cast %120 : vector<1x1x8x256xf32> to vector<8x256xf32>
    %122 = vector.shape_cast %110 : vector<8x256xf32> to vector<1x1x8x256xf32>
    tpu.vector_store %arg4[%c0_134, %c2_135, %c0_136, %c0_137], %122 {strides = array<i32>} : memref<1x8x8x256xf32, #tpu.memory_space<vmem>>, vector<1x1x8x256xf32>,
    %c0_138 = arith.constant 0 : index
    %c0_139 = arith.constant 0 : index
    %c7_140 = arith.constant 7 : index
    %123 = vector.load %arg1[%c0_138, %c0_139, %c7_140] : memref<1x8x384xf32, #tpu.memory_space<vmem>>, vector<1x8x256xf32>
    %124 = vector.shape_cast %123 : vector<1x8x256xf32> to vector<8x256xf32>
    %c0_141 = arith.constant 0 : index
    %c0_142 = arith.constant 0 : index
    %125 = vector.load %arg5[%c0_141, %c0_142] : memref<64x256xf32, #tpu.memory_space<vmem>>, vector<8x256xf32>
    tpu.vector_store %arg5[%c0_141, %c0_142], %124 {strides = array<i32>} : memref<64x256xf32, #tpu.memory_space<vmem>>, vector<8x256xf32>,
    %c0_143 = arith.constant 0 : index
    %c0_144 = arith.constant 0 : index
    %c8_145 = arith.constant 8 : index
    %126 = vector.load %arg1[%c0_143, %c0_144, %c8_145] : memref<1x8x384xf32, #tpu.memory_space<vmem>>, vector<1x8x256xf32>
    %127 = vector.shape_cast %126 : vector<1x8x256xf32> to vector<8x256xf32>
    %c8_146 = arith.constant 8 : index
    %c0_147 = arith.constant 0 : index
    %128 = vector.load %arg5[%c8_146, %c0_147] : memref<64x256xf32, #tpu.memory_space<vmem>>, vector<8x256xf32>
    tpu.vector_store %arg5[%c8_146, %c0_147], %127 {strides = array<i32>} : memref<64x256xf32, #tpu.memory_space<vmem>>, vector<8x256xf32>,
    %c0_148 = arith.constant 0 : index
    %c0_149 = arith.constant 0 : index
    %c13_150 = arith.constant 13 : index
    %129 = vector.load %arg1[%c0_148, %c0_149, %c13_150] : memref<1x8x384xf32, #tpu.memory_space<vmem>>, vector<1x8x256xf32>
    %130 = vector.shape_cast %129 : vector<1x8x256xf32> to vector<8x256xf32>
    %c16_151 = arith.constant 16 : index
    %c0_152 = arith.constant 0 : index
    %131 = vector.load %arg5[%c16_151, %c0_152] : memref<64x256xf32, #tpu.memory_space<vmem>>, vector<8x256xf32>
    tpu.vector_store %arg5[%c16_151, %c0_152], %130 {strides = array<i32>} : memref<64x256xf32, #tpu.memory_space<vmem>>, vector<8x256xf32>,
    %c0_153 = arith.constant 0 : index
    %c0_154 = arith.constant 0 : index
    %c14 = arith.constant 14 : index
    %132 = vector.load %arg1[%c0_153, %c0_154, %c14] : memref<1x8x384xf32, #tpu.memory_space<vmem>>, vector<1x8x256xf32>
    %133 = vector.shape_cast %132 : vector<1x8x256xf32> to vector<8x256xf32>
    %c24_155 = arith.constant 24 : index
    %c0_156 = arith.constant 0 : index
    %134 = vector.load %arg5[%c24_155, %c0_156] : memref<64x256xf32, #tpu.memory_space<vmem>>, vector<8x256xf32>
    tpu.vector_store %arg5[%c24_155, %c0_156], %133 {strides = array<i32>} : memref<64x256xf32, #tpu.memory_space<vmem>>, vector<8x256xf32>,
    %c0_157 = arith.constant 0 : index
    %c0_158 = arith.constant 0 : index
    %c43_159 = arith.constant 43 : index
    %135 = vector.load %arg1[%c0_157, %c0_158, %c43_159] : memref<1x8x384xf32, #tpu.memory_space<vmem>>, vector<1x8x256xf32>
    %136 = vector.shape_cast %135 : vector<1x8x256xf32> to vector<8x256xf32>
    %c32_160 = arith.constant 32 : index
    %c0_161 = arith.constant 0 : index
    %137 = vector.load %arg5[%c32_160, %c0_161] : memref<64x256xf32, #tpu.memory_space<vmem>>, vector<8x256xf32>
    tpu.vector_store %arg5[%c32_160, %c0_161], %136 {strides = array<i32>} : memref<64x256xf32, #tpu.memory_space<vmem>>, vector<8x256xf32>,
    %c0_162 = arith.constant 0 : index
    %c0_163 = arith.constant 0 : index
    %c44_164 = arith.constant 44 : index
    %138 = vector.load %arg1[%c0_162, %c0_163, %c44_164] : memref<1x8x384xf32, #tpu.memory_space<vmem>>, vector<1x8x256xf32>
    %139 = vector.shape_cast %138 : vector<1x8x256xf32> to vector<8x256xf32>
    %c40_165 = arith.constant 40 : index
    %c0_166 = arith.constant 0 : index
    %140 = vector.load %arg5[%c40_165, %c0_166] : memref<64x256xf32, #tpu.memory_space<vmem>>, vector<8x256xf32>
    tpu.vector_store %arg5[%c40_165, %c0_166], %139 {strides = array<i32>} : memref<64x256xf32, #tpu.memory_space<vmem>>, vector<8x256xf32>,
    %c0_167 = arith.constant 0 : index
    %c0_168 = arith.constant 0 : index
    %c49_169 = arith.constant 49 : index
    %141 = vector.load %arg1[%c0_167, %c0_168, %c49_169] : memref<1x8x384xf32, #tpu.memory_space<vmem>>, vector<1x8x256xf32>
    %142 = vector.shape_cast %141 : vector<1x8x256xf32> to vector<8x256xf32>
    %c48_170 = arith.constant 48 : index
    %c0_171 = arith.constant 0 : index
    %143 = vector.load %arg5[%c48_170, %c0_171] : memref<64x256xf32, #tpu.memory_space<vmem>>, vector<8x256xf32>
    tpu.vector_store %arg5[%c48_170, %c0_171], %142 {strides = array<i32>} : memref<64x256xf32, #tpu.memory_space<vmem>>, vector<8x256xf32>,
    %c0_172 = arith.constant 0 : index
    %c0_173 = arith.constant 0 : index
    %c50 = arith.constant 50 : index
    %144 = vector.load %arg1[%c0_172, %c0_173, %c50] : memref<1x8x384xf32, #tpu.memory_space<vmem>>, vector<1x8x256xf32>
    %145 = vector.shape_cast %144 : vector<1x8x256xf32> to vector<8x256xf32>
    %c56_174 = arith.constant 56 : index
    %c0_175 = arith.constant 0 : index
    %146 = vector.load %arg5[%c56_174, %c0_175] : memref<64x256xf32, #tpu.memory_space<vmem>>, vector<8x256xf32>
    tpu.vector_store %arg5[%c56_174, %c0_175], %145 {strides = array<i32>} : memref<64x256xf32, #tpu.memory_space<vmem>>, vector<8x256xf32>,
    %c3 = arith.constant 3 : index
    %c0_176 = arith.constant 0 : index
    %c0_177 = arith.constant 0 : index
    %147 = vector.load %arg3[%c3, %c0_176, %c0_177] : memref<8x8x64xf32, #tpu.memory_space<vmem>>, vector<1x8x64xf32>
    %148 = vector.shape_cast %147 : vector<1x8x64xf32> to vector<8x64xf32>
    %c0_178 = arith.constant 0 : index
    %c0_179 = arith.constant 0 : index
    %149 = vector.load %arg5[%c0_178, %c0_179] : memref<64x256xf32, #tpu.memory_space<vmem>>, vector<64x256xf32>
    %cst_180 = arith.constant dense<0.000000e+00> : vector<8x256xf32>
    %150 = tpu.matmul %148, %149, %cst_180 {dimension_numbers = #tpu.dot_dimension_numbers<[1], [0], [0], [1], [0, 0, 1, 1], [], []>} : vector<8x64xf32>, vector<64x256xf32>, vector<8x256xf32> -> vector<8x256xf32>
    %151 = vector.broadcast %0 : vector<1x256xf32> to vector<8x256xf32>
    %152 = arith.mulf %150, %151 : vector<8x256xf32>
    %cst_181 = arith.constant dense<0.000000e+00> : vector<8xf32>
    %153 = vector.multi_reduction <add>, %152, %cst_181 [1] : vector<8x256xf32> to vector<8xf32>
    %154 = vector.shape_cast %153 : vector<8xf32> to vector<8x1xf32>
    %155 = arith.addf %115, %154 : vector<8x1xf32>
    %156 = arith.mulf %152, %152 : vector<8x256xf32>
    %cst_182 = arith.constant dense<0.000000e+00> : vector<8xf32>
    %157 = vector.multi_reduction <add>, %156, %cst_182 [1] : vector<8x256xf32> to vector<8xf32>
    %158 = vector.shape_cast %157 : vector<8xf32> to vector<8x1xf32>
    %159 = arith.addf %119, %158 : vector<8x1xf32>
    %c0_183 = arith.constant 0 : index
    %c3_184 = arith.constant 3 : index
    %c0_185 = arith.constant 0 : index
    %c0_186 = arith.constant 0 : index
    %160 = vector.load %arg4[%c0_183, %c3_184, %c0_185, %c0_186] : memref<1x8x8x256xf32, #tpu.memory_space<vmem>>, vector<1x1x8x256xf32>
    %161 = vector.shape_cast %160 : vector<1x1x8x256xf32> to vector<8x256xf32>
    %162 = vector.shape_cast %150 : vector<8x256xf32> to vector<1x1x8x256xf32>
    tpu.vector_store %arg4[%c0_183, %c3_184, %c0_185, %c0_186], %162 {strides = array<i32>} : memref<1x8x8x256xf32, #tpu.memory_space<vmem>>, vector<1x1x8x256xf32>,
    %c0_187 = arith.constant 0 : index
    %c0_188 = arith.constant 0 : index
    %c36_189 = arith.constant 36 : index
    %163 = vector.load %arg1[%c0_187, %c0_188, %c36_189] : memref<1x8x384xf32, #tpu.memory_space<vmem>>, vector<1x8x256xf32>
    %164 = vector.shape_cast %163 : vector<1x8x256xf32> to vector<8x256xf32>
    %c0_190 = arith.constant 0 : index
    %c0_191 = arith.constant 0 : index
    %165 = vector.load %arg5[%c0_190, %c0_191] : memref<64x256xf32, #tpu.memory_space<vmem>>, vector<8x256xf32>
    tpu.vector_store %arg5[%c0_190, %c0_191], %164 {strides = array<i32>} : memref<64x256xf32, #tpu.memory_space<vmem>>, vector<8x256xf32>,
    %c0_192 = arith.constant 0 : index
    %c0_193 = arith.constant 0 : index
    %c37_194 = arith.constant 37 : index
    %166 = vector.load %arg1[%c0_192, %c0_193, %c37_194] : memref<1x8x384xf32, #tpu.memory_space<vmem>>, vector<1x8x256xf32>
    %167 = vector.shape_cast %166 : vector<1x8x256xf32> to vector<8x256xf32>
    %c8_195 = arith.constant 8 : index
    %c0_196 = arith.constant 0 : index
    %168 = vector.load %arg5[%c8_195, %c0_196] : memref<64x256xf32, #tpu.memory_space<vmem>>, vector<8x256xf32>
    tpu.vector_store %arg5[%c8_195, %c0_196], %167 {strides = array<i32>} : memref<64x256xf32, #tpu.memory_space<vmem>>, vector<8x256xf32>,
    %c0_197 = arith.constant 0 : index
    %c0_198 = arith.constant 0 : index
    %c42_199 = arith.constant 42 : index
    %169 = vector.load %arg1[%c0_197, %c0_198, %c42_199] : memref<1x8x384xf32, #tpu.memory_space<vmem>>, vector<1x8x256xf32>
    %170 = vector.shape_cast %169 : vector<1x8x256xf32> to vector<8x256xf32>
    %c16_200 = arith.constant 16 : index
    %c0_201 = arith.constant 0 : index
    %171 = vector.load %arg5[%c16_200, %c0_201] : memref<64x256xf32, #tpu.memory_space<vmem>>, vector<8x256xf32>
    tpu.vector_store %arg5[%c16_200, %c0_201], %170 {strides = array<i32>} : memref<64x256xf32, #tpu.memory_space<vmem>>, vector<8x256xf32>,
    %c0_202 = arith.constant 0 : index
    %c0_203 = arith.constant 0 : index
    %c43_204 = arith.constant 43 : index
    %172 = vector.load %arg1[%c0_202, %c0_203, %c43_204] : memref<1x8x384xf32, #tpu.memory_space<vmem>>, vector<1x8x256xf32>
    %173 = vector.shape_cast %172 : vector<1x8x256xf32> to vector<8x256xf32>
    %c24_205 = arith.constant 24 : index
    %c0_206 = arith.constant 0 : index
    %174 = vector.load %arg5[%c24_205, %c0_206] : memref<64x256xf32, #tpu.memory_space<vmem>>, vector<8x256xf32>
    tpu.vector_store %arg5[%c24_205, %c0_206], %173 {strides = array<i32>} : memref<64x256xf32, #tpu.memory_space<vmem>>, vector<8x256xf32>,
    %c0_207 = arith.constant 0 : index
    %c0_208 = arith.constant 0 : index
    %c72 = arith.constant 72 : index
    %175 = vector.load %arg1[%c0_207, %c0_208, %c72] : memref<1x8x384xf32, #tpu.memory_space<vmem>>, vector<1x8x256xf32>
    %176 = vector.shape_cast %175 : vector<1x8x256xf32> to vector<8x256xf32>
    %c32_209 = arith.constant 32 : index
    %c0_210 = arith.constant 0 : index
    %177 = vector.load %arg5[%c32_209, %c0_210] : memref<64x256xf32, #tpu.memory_space<vmem>>, vector<8x256xf32>
    tpu.vector_store %arg5[%c32_209, %c0_210], %176 {strides = array<i32>} : memref<64x256xf32, #tpu.memory_space<vmem>>, vector<8x256xf32>,
    %c0_211 = arith.constant 0 : index
    %c0_212 = arith.constant 0 : index
    %c73 = arith.constant 73 : index
    %178 = vector.load %arg1[%c0_211, %c0_212, %c73] : memref<1x8x384xf32, #tpu.memory_space<vmem>>, vector<1x8x256xf32>
    %179 = vector.shape_cast %178 : vector<1x8x256xf32> to vector<8x256xf32>
    %c40_213 = arith.constant 40 : index
    %c0_214 = arith.constant 0 : index
    %180 = vector.load %arg5[%c40_213, %c0_214] : memref<64x256xf32, #tpu.memory_space<vmem>>, vector<8x256xf32>
    tpu.vector_store %arg5[%c40_213, %c0_214], %179 {strides = array<i32>} : memref<64x256xf32, #tpu.memory_space<vmem>>, vector<8x256xf32>,
    %c0_215 = arith.constant 0 : index
    %c0_216 = arith.constant 0 : index
    %c78 = arith.constant 78 : index
    %181 = vector.load %arg1[%c0_215, %c0_216, %c78] : memref<1x8x384xf32, #tpu.memory_space<vmem>>, vector<1x8x256xf32>
    %182 = vector.shape_cast %181 : vector<1x8x256xf32> to vector<8x256xf32>
    %c48_217 = arith.constant 48 : index
    %c0_218 = arith.constant 0 : index
    %183 = vector.load %arg5[%c48_217, %c0_218] : memref<64x256xf32, #tpu.memory_space<vmem>>, vector<8x256xf32>
    tpu.vector_store %arg5[%c48_217, %c0_218], %182 {strides = array<i32>} : memref<64x256xf32, #tpu.memory_space<vmem>>, vector<8x256xf32>,
    %c0_219 = arith.constant 0 : index
    %c0_220 = arith.constant 0 : index
    %c79 = arith.constant 79 : index
    %184 = vector.load %arg1[%c0_219, %c0_220, %c79] : memref<1x8x384xf32, #tpu.memory_space<vmem>>, vector<1x8x256xf32>
    %185 = vector.shape_cast %184 : vector<1x8x256xf32> to vector<8x256xf32>
    %c56_221 = arith.constant 56 : index
    %c0_222 = arith.constant 0 : index
    %186 = vector.load %arg5[%c56_221, %c0_222] : memref<64x256xf32, #tpu.memory_space<vmem>>, vector<8x256xf32>
    tpu.vector_store %arg5[%c56_221, %c0_222], %185 {strides = array<i32>} : memref<64x256xf32, #tpu.memory_space<vmem>>, vector<8x256xf32>,
    %c4 = arith.constant 4 : index
    %c0_223 = arith.constant 0 : index
    %c0_224 = arith.constant 0 : index
    %187 = vector.load %arg3[%c4, %c0_223, %c0_224] : memref<8x8x64xf32, #tpu.memory_space<vmem>>, vector<1x8x64xf32>
    %188 = vector.shape_cast %187 : vector<1x8x64xf32> to vector<8x64xf32>
    %c0_225 = arith.constant 0 : index
    %c0_226 = arith.constant 0 : index
    %189 = vector.load %arg5[%c0_225, %c0_226] : memref<64x256xf32, #tpu.memory_space<vmem>>, vector<64x256xf32>
    %cst_227 = arith.constant dense<0.000000e+00> : vector<8x256xf32>
    %190 = tpu.matmul %188, %189, %cst_227 {dimension_numbers = #tpu.dot_dimension_numbers<[1], [0], [0], [1], [0, 0, 1, 1], [], []>} : vector<8x64xf32>, vector<64x256xf32>, vector<8x256xf32> -> vector<8x256xf32>
    %191 = vector.broadcast %0 : vector<1x256xf32> to vector<8x256xf32>
    %192 = arith.mulf %190, %191 : vector<8x256xf32>
    %cst_228 = arith.constant dense<0.000000e+00> : vector<8xf32>
    %193 = vector.multi_reduction <add>, %192, %cst_228 [1] : vector<8x256xf32> to vector<8xf32>
    %194 = vector.shape_cast %193 : vector<8xf32> to vector<8x1xf32>
    %195 = arith.addf %155, %194 : vector<8x1xf32>
    %196 = arith.mulf %192, %192 : vector<8x256xf32>
    %cst_229 = arith.constant dense<0.000000e+00> : vector<8xf32>
    %197 = vector.multi_reduction <add>, %196, %cst_229 [1] : vector<8x256xf32> to vector<8xf32>
    %198 = vector.shape_cast %197 : vector<8xf32> to vector<8x1xf32>
    %199 = arith.addf %159, %198 : vector<8x1xf32>
    %c0_230 = arith.constant 0 : index
    %c4_231 = arith.constant 4 : index
    %c0_232 = arith.constant 0 : index
    %c0_233 = arith.constant 0 : index
    %200 = vector.load %arg4[%c0_230, %c4_231, %c0_232, %c0_233] : memref<1x8x8x256xf32, #tpu.memory_space<vmem>>, vector<1x1x8x256xf32>
    %201 = vector.shape_cast %200 : vector<1x1x8x256xf32> to vector<8x256xf32>
    %202 = vector.shape_cast %190 : vector<8x256xf32> to vector<1x1x8x256xf32>
    tpu.vector_store %arg4[%c0_230, %c4_231, %c0_232, %c0_233], %202 {strides = array<i32>} : memref<1x8x8x256xf32, #tpu.memory_space<vmem>>, vector<1x1x8x256xf32>,
    %c0_234 = arith.constant 0 : index
    %c0_235 = arith.constant 0 : index
    %c37_236 = arith.constant 37 : index
    %203 = vector.load %arg1[%c0_234, %c0_235, %c37_236] : memref<1x8x384xf32, #tpu.memory_space<vmem>>, vector<1x8x256xf32>
    %204 = vector.shape_cast %203 : vector<1x8x256xf32> to vector<8x256xf32>
    %c0_237 = arith.constant 0 : index
    %c0_238 = arith.constant 0 : index
    %205 = vector.load %arg5[%c0_237, %c0_238] : memref<64x256xf32, #tpu.memory_space<vmem>>, vector<8x256xf32>
    tpu.vector_store %arg5[%c0_237, %c0_238], %204 {strides = array<i32>} : memref<64x256xf32, #tpu.memory_space<vmem>>, vector<8x256xf32>,
    %c0_239 = arith.constant 0 : index
    %c0_240 = arith.constant 0 : index
    %c38_241 = arith.constant 38 : index
    %206 = vector.load %arg1[%c0_239, %c0_240, %c38_241] : memref<1x8x384xf32, #tpu.memory_space<vmem>>, vector<1x8x256xf32>
    %207 = vector.shape_cast %206 : vector<1x8x256xf32> to vector<8x256xf32>
    %c8_242 = arith.constant 8 : index
    %c0_243 = arith.constant 0 : index
    %208 = vector.load %arg5[%c8_242, %c0_243] : memref<64x256xf32, #tpu.memory_space<vmem>>, vector<8x256xf32>
    tpu.vector_store %arg5[%c8_242, %c0_243], %207 {strides = array<i32>} : memref<64x256xf32, #tpu.memory_space<vmem>>, vector<8x256xf32>,
    %c0_244 = arith.constant 0 : index
    %c0_245 = arith.constant 0 : index
    %c43_246 = arith.constant 43 : index
    %209 = vector.load %arg1[%c0_244, %c0_245, %c43_246] : memref<1x8x384xf32, #tpu.memory_space<vmem>>, vector<1x8x256xf32>
    %210 = vector.shape_cast %209 : vector<1x8x256xf32> to vector<8x256xf32>
    %c16_247 = arith.constant 16 : index
    %c0_248 = arith.constant 0 : index
    %211 = vector.load %arg5[%c16_247, %c0_248] : memref<64x256xf32, #tpu.memory_space<vmem>>, vector<8x256xf32>
    tpu.vector_store %arg5[%c16_247, %c0_248], %210 {strides = array<i32>} : memref<64x256xf32, #tpu.memory_space<vmem>>, vector<8x256xf32>,
    %c0_249 = arith.constant 0 : index
    %c0_250 = arith.constant 0 : index
    %c44_251 = arith.constant 44 : index
    %212 = vector.load %arg1[%c0_249, %c0_250, %c44_251] : memref<1x8x384xf32, #tpu.memory_space<vmem>>, vector<1x8x256xf32>
    %213 = vector.shape_cast %212 : vector<1x8x256xf32> to vector<8x256xf32>
    %c24_252 = arith.constant 24 : index
    %c0_253 = arith.constant 0 : index
    %214 = vector.load %arg5[%c24_252, %c0_253] : memref<64x256xf32, #tpu.memory_space<vmem>>, vector<8x256xf32>
    tpu.vector_store %arg5[%c24_252, %c0_253], %213 {strides = array<i32>} : memref<64x256xf32, #tpu.memory_space<vmem>>, vector<8x256xf32>,
    %c0_254 = arith.constant 0 : index
    %c0_255 = arith.constant 0 : index
    %c73_256 = arith.constant 73 : index
    %215 = vector.load %arg1[%c0_254, %c0_255, %c73_256] : memref<1x8x384xf32, #tpu.memory_space<vmem>>, vector<1x8x256xf32>
    %216 = vector.shape_cast %215 : vector<1x8x256xf32> to vector<8x256xf32>
    %c32_257 = arith.constant 32 : index
    %c0_258 = arith.constant 0 : index
    %217 = vector.load %arg5[%c32_257, %c0_258] : memref<64x256xf32, #tpu.memory_space<vmem>>, vector<8x256xf32>
    tpu.vector_store %arg5[%c32_257, %c0_258], %216 {strides = array<i32>} : memref<64x256xf32, #tpu.memory_space<vmem>>, vector<8x256xf32>,
    %c0_259 = arith.constant 0 : index
    %c0_260 = arith.constant 0 : index
    %c74 = arith.constant 74 : index
    %218 = vector.load %arg1[%c0_259, %c0_260, %c74] : memref<1x8x384xf32, #tpu.memory_space<vmem>>, vector<1x8x256xf32>
    %219 = vector.shape_cast %218 : vector<1x8x256xf32> to vector<8x256xf32>
    %c40_261 = arith.constant 40 : index
    %c0_262 = arith.constant 0 : index
    %220 = vector.load %arg5[%c40_261, %c0_262] : memref<64x256xf32, #tpu.memory_space<vmem>>, vector<8x256xf32>
    tpu.vector_store %arg5[%c40_261, %c0_262], %219 {strides = array<i32>} : memref<64x256xf32, #tpu.memory_space<vmem>>, vector<8x256xf32>,
    %c0_263 = arith.constant 0 : index
    %c0_264 = arith.constant 0 : index
    %c79_265 = arith.constant 79 : index
    %221 = vector.load %arg1[%c0_263, %c0_264, %c79_265] : memref<1x8x384xf32, #tpu.memory_space<vmem>>, vector<1x8x256xf32>
    %222 = vector.shape_cast %221 : vector<1x8x256xf32> to vector<8x256xf32>
    %c48_266 = arith.constant 48 : index
    %c0_267 = arith.constant 0 : index
    %223 = vector.load %arg5[%c48_266, %c0_267] : memref<64x256xf32, #tpu.memory_space<vmem>>, vector<8x256xf32>
    tpu.vector_store %arg5[%c48_266, %c0_267], %222 {strides = array<i32>} : memref<64x256xf32, #tpu.memory_space<vmem>>, vector<8x256xf32>,
    %c0_268 = arith.constant 0 : index
    %c0_269 = arith.constant 0 : index
    %c80 = arith.constant 80 : index
    %224 = vector.load %arg1[%c0_268, %c0_269, %c80] : memref<1x8x384xf32, #tpu.memory_space<vmem>>, vector<1x8x256xf32>
    %225 = vector.shape_cast %224 : vector<1x8x256xf32> to vector<8x256xf32>
    %c56_270 = arith.constant 56 : index
    %c0_271 = arith.constant 0 : index
    %226 = vector.load %arg5[%c56_270, %c0_271] : memref<64x256xf32, #tpu.memory_space<vmem>>, vector<8x256xf32>
    tpu.vector_store %arg5[%c56_270, %c0_271], %225 {strides = array<i32>} : memref<64x256xf32, #tpu.memory_space<vmem>>, vector<8x256xf32>,
    %c5 = arith.constant 5 : index
    %c0_272 = arith.constant 0 : index
    %c0_273 = arith.constant 0 : index
    %227 = vector.load %arg3[%c5, %c0_272, %c0_273] : memref<8x8x64xf32, #tpu.memory_space<vmem>>, vector<1x8x64xf32>
    %228 = vector.shape_cast %227 : vector<1x8x64xf32> to vector<8x64xf32>
    %c0_274 = arith.constant 0 : index
    %c0_275 = arith.constant 0 : index
    %229 = vector.load %arg5[%c0_274, %c0_275] : memref<64x256xf32, #tpu.memory_space<vmem>>, vector<64x256xf32>
    %cst_276 = arith.constant dense<0.000000e+00> : vector<8x256xf32>
    %230 = tpu.matmul %228, %229, %cst_276 {dimension_numbers = #tpu.dot_dimension_numbers<[1], [0], [0], [1], [0, 0, 1, 1], [], []>} : vector<8x64xf32>, vector<64x256xf32>, vector<8x256xf32> -> vector<8x256xf32>
    %231 = vector.broadcast %0 : vector<1x256xf32> to vector<8x256xf32>
    %232 = arith.mulf %230, %231 : vector<8x256xf32>
    %cst_277 = arith.constant dense<0.000000e+00> : vector<8xf32>
    %233 = vector.multi_reduction <add>, %232, %cst_277 [1] : vector<8x256xf32> to vector<8xf32>
    %234 = vector.shape_cast %233 : vector<8xf32> to vector<8x1xf32>
    %235 = arith.addf %195, %234 : vector<8x1xf32>
    %236 = arith.mulf %232, %232 : vector<8x256xf32>
    %cst_278 = arith.constant dense<0.000000e+00> : vector<8xf32>
    %237 = vector.multi_reduction <add>, %236, %cst_278 [1] : vector<8x256xf32> to vector<8xf32>
    %238 = vector.shape_cast %237 : vector<8xf32> to vector<8x1xf32>
    %239 = arith.addf %199, %238 : vector<8x1xf32>
    %c0_279 = arith.constant 0 : index
    %c5_280 = arith.constant 5 : index
    %c0_281 = arith.constant 0 : index
    %c0_282 = arith.constant 0 : index
    %240 = vector.load %arg4[%c0_279, %c5_280, %c0_281, %c0_282] : memref<1x8x8x256xf32, #tpu.memory_space<vmem>>, vector<1x1x8x256xf32>
    %241 = vector.shape_cast %240 : vector<1x1x8x256xf32> to vector<8x256xf32>
    %242 = vector.shape_cast %230 : vector<8x256xf32> to vector<1x1x8x256xf32>
    tpu.vector_store %arg4[%c0_279, %c5_280, %c0_281, %c0_282], %242 {strides = array<i32>} : memref<1x8x8x256xf32, #tpu.memory_space<vmem>>, vector<1x1x8x256xf32>,
    %c0_283 = arith.constant 0 : index
    %c0_284 = arith.constant 0 : index
    %c42_285 = arith.constant 42 : index
    %243 = vector.load %arg1[%c0_283, %c0_284, %c42_285] : memref<1x8x384xf32, #tpu.memory_space<vmem>>, vector<1x8x256xf32>
    %244 = vector.shape_cast %243 : vector<1x8x256xf32> to vector<8x256xf32>
    %c0_286 = arith.constant 0 : index
    %c0_287 = arith.constant 0 : index
    %245 = vector.load %arg5[%c0_286, %c0_287] : memref<64x256xf32, #tpu.memory_space<vmem>>, vector<8x256xf32>
    tpu.vector_store %arg5[%c0_286, %c0_287], %244 {strides = array<i32>} : memref<64x256xf32, #tpu.memory_space<vmem>>, vector<8x256xf32>,
    %c0_288 = arith.constant 0 : index
    %c0_289 = arith.constant 0 : index
    %c43_290 = arith.constant 43 : index
    %246 = vector.load %arg1[%c0_288, %c0_289, %c43_290] : memref<1x8x384xf32, #tpu.memory_space<vmem>>, vector<1x8x256xf32>
    %247 = vector.shape_cast %246 : vector<1x8x256xf32> to vector<8x256xf32>
    %c8_291 = arith.constant 8 : index
    %c0_292 = arith.constant 0 : index
    %248 = vector.load %arg5[%c8_291, %c0_292] : memref<64x256xf32, #tpu.memory_space<vmem>>, vector<8x256xf32>
    tpu.vector_store %arg5[%c8_291, %c0_292], %247 {strides = array<i32>} : memref<64x256xf32, #tpu.memory_space<vmem>>, vector<8x256xf32>,
    %c0_293 = arith.constant 0 : index
    %c0_294 = arith.constant 0 : index
    %c48_295 = arith.constant 48 : index
    %249 = vector.load %arg1[%c0_293, %c0_294, %c48_295] : memref<1x8x384xf32, #tpu.memory_space<vmem>>, vector<1x8x256xf32>
    %250 = vector.shape_cast %249 : vector<1x8x256xf32> to vector<8x256xf32>
    %c16_296 = arith.constant 16 : index
    %c0_297 = arith.constant 0 : index
    %251 = vector.load %arg5[%c16_296, %c0_297] : memref<64x256xf32, #tpu.memory_space<vmem>>, vector<8x256xf32>
    tpu.vector_store %arg5[%c16_296, %c0_297], %250 {strides = array<i32>} : memref<64x256xf32, #tpu.memory_space<vmem>>, vector<8x256xf32>,
    %c0_298 = arith.constant 0 : index
    %c0_299 = arith.constant 0 : index
    %c49_300 = arith.constant 49 : index
    %252 = vector.load %arg1[%c0_298, %c0_299, %c49_300] : memref<1x8x384xf32, #tpu.memory_space<vmem>>, vector<1x8x256xf32>
    %253 = vector.shape_cast %252 : vector<1x8x256xf32> to vector<8x256xf32>
    %c24_301 = arith.constant 24 : index
    %c0_302 = arith.constant 0 : index
    %254 = vector.load %arg5[%c24_301, %c0_302] : memref<64x256xf32, #tpu.memory_space<vmem>>, vector<8x256xf32>
    tpu.vector_store %arg5[%c24_301, %c0_302], %253 {strides = array<i32>} : memref<64x256xf32, #tpu.memory_space<vmem>>, vector<8x256xf32>,
    %c0_303 = arith.constant 0 : index
    %c0_304 = arith.constant 0 : index
    %c78_305 = arith.constant 78 : index
    %255 = vector.load %arg1[%c0_303, %c0_304, %c78_305] : memref<1x8x384xf32, #tpu.memory_space<vmem>>, vector<1x8x256xf32>
    %256 = vector.shape_cast %255 : vector<1x8x256xf32> to vector<8x256xf32>
    %c32_306 = arith.constant 32 : index
    %c0_307 = arith.constant 0 : index
    %257 = vector.load %arg5[%c32_306, %c0_307] : memref<64x256xf32, #tpu.memory_space<vmem>>, vector<8x256xf32>
    tpu.vector_store %arg5[%c32_306, %c0_307], %256 {strides = array<i32>} : memref<64x256xf32, #tpu.memory_space<vmem>>, vector<8x256xf32>,
    %c0_308 = arith.constant 0 : index
    %c0_309 = arith.constant 0 : index
    %c79_310 = arith.constant 79 : index
    %258 = vector.load %arg1[%c0_308, %c0_309, %c79_310] : memref<1x8x384xf32, #tpu.memory_space<vmem>>, vector<1x8x256xf32>
    %259 = vector.shape_cast %258 : vector<1x8x256xf32> to vector<8x256xf32>
    %c40_311 = arith.constant 40 : index
    %c0_312 = arith.constant 0 : index
    %260 = vector.load %arg5[%c40_311, %c0_312] : memref<64x256xf32, #tpu.memory_space<vmem>>, vector<8x256xf32>
    tpu.vector_store %arg5[%c40_311, %c0_312], %259 {strides = array<i32>} : memref<64x256xf32, #tpu.memory_space<vmem>>, vector<8x256xf32>,
    %c0_313 = arith.constant 0 : index
    %c0_314 = arith.constant 0 : index
    %c84 = arith.constant 84 : index
    %261 = vector.load %arg1[%c0_313, %c0_314, %c84] : memref<1x8x384xf32, #tpu.memory_space<vmem>>, vector<1x8x256xf32>
    %262 = vector.shape_cast %261 : vector<1x8x256xf32> to vector<8x256xf32>
    %c48_315 = arith.constant 48 : index
    %c0_316 = arith.constant 0 : index
    %263 = vector.load %arg5[%c48_315, %c0_316] : memref<64x256xf32, #tpu.memory_space<vmem>>, vector<8x256xf32>
    tpu.vector_store %arg5[%c48_315, %c0_316], %262 {strides = array<i32>} : memref<64x256xf32, #tpu.memory_space<vmem>>, vector<8x256xf32>,
    %c0_317 = arith.constant 0 : index
    %c0_318 = arith.constant 0 : index
    %c85 = arith.constant 85 : index
    %264 = vector.load %arg1[%c0_317, %c0_318, %c85] : memref<1x8x384xf32, #tpu.memory_space<vmem>>, vector<1x8x256xf32>
    %265 = vector.shape_cast %264 : vector<1x8x256xf32> to vector<8x256xf32>
    %c56_319 = arith.constant 56 : index
    %c0_320 = arith.constant 0 : index
    %266 = vector.load %arg5[%c56_319, %c0_320] : memref<64x256xf32, #tpu.memory_space<vmem>>, vector<8x256xf32>
    tpu.vector_store %arg5[%c56_319, %c0_320], %265 {strides = array<i32>} : memref<64x256xf32, #tpu.memory_space<vmem>>, vector<8x256xf32>,
    %c6_321 = arith.constant 6 : index
    %c0_322 = arith.constant 0 : index
    %c0_323 = arith.constant 0 : index
    %267 = vector.load %arg3[%c6_321, %c0_322, %c0_323] : memref<8x8x64xf32, #tpu.memory_space<vmem>>, vector<1x8x64xf32>
    %268 = vector.shape_cast %267 : vector<1x8x64xf32> to vector<8x64xf32>
    %c0_324 = arith.constant 0 : index
    %c0_325 = arith.constant 0 : index
    %269 = vector.load %arg5[%c0_324, %c0_325] : memref<64x256xf32, #tpu.memory_space<vmem>>, vector<64x256xf32>
    %cst_326 = arith.constant dense<0.000000e+00> : vector<8x256xf32>
    %270 = tpu.matmul %268, %269, %cst_326 {dimension_numbers = #tpu.dot_dimension_numbers<[1], [0], [0], [1], [0, 0, 1, 1], [], []>} : vector<8x64xf32>, vector<64x256xf32>, vector<8x256xf32> -> vector<8x256xf32>
    %271 = vector.broadcast %0 : vector<1x256xf32> to vector<8x256xf32>
    %272 = arith.mulf %270, %271 : vector<8x256xf32>
    %cst_327 = arith.constant dense<0.000000e+00> : vector<8xf32>
    %273 = vector.multi_reduction <add>, %272, %cst_327 [1] : vector<8x256xf32> to vector<8xf32>
    %274 = vector.shape_cast %273 : vector<8xf32> to vector<8x1xf32>
    %275 = arith.addf %235, %274 : vector<8x1xf32>
    %276 = arith.mulf %272, %272 : vector<8x256xf32>
    %cst_328 = arith.constant dense<0.000000e+00> : vector<8xf32>
    %277 = vector.multi_reduction <add>, %276, %cst_328 [1] : vector<8x256xf32> to vector<8xf32>
    %278 = vector.shape_cast %277 : vector<8xf32> to vector<8x1xf32>
    %279 = arith.addf %239, %278 : vector<8x1xf32>
    %c0_329 = arith.constant 0 : index
    %c6_330 = arith.constant 6 : index
    %c0_331 = arith.constant 0 : index
    %c0_332 = arith.constant 0 : index
    %280 = vector.load %arg4[%c0_329, %c6_330, %c0_331, %c0_332] : memref<1x8x8x256xf32, #tpu.memory_space<vmem>>, vector<1x1x8x256xf32>
    %281 = vector.shape_cast %280 : vector<1x1x8x256xf32> to vector<8x256xf32>
    %282 = vector.shape_cast %270 : vector<8x256xf32> to vector<1x1x8x256xf32>
    tpu.vector_store %arg4[%c0_329, %c6_330, %c0_331, %c0_332], %282 {strides = array<i32>} : memref<1x8x8x256xf32, #tpu.memory_space<vmem>>, vector<1x1x8x256xf32>,
    %c0_333 = arith.constant 0 : index
    %c0_334 = arith.constant 0 : index
    %c43_335 = arith.constant 43 : index
    %283 = vector.load %arg1[%c0_333, %c0_334, %c43_335] : memref<1x8x384xf32, #tpu.memory_space<vmem>>, vector<1x8x256xf32>
    %284 = vector.shape_cast %283 : vector<1x8x256xf32> to vector<8x256xf32>
    %c0_336 = arith.constant 0 : index
    %c0_337 = arith.constant 0 : index
    %285 = vector.load %arg5[%c0_336, %c0_337] : memref<64x256xf32, #tpu.memory_space<vmem>>, vector<8x256xf32>
    tpu.vector_store %arg5[%c0_336, %c0_337], %284 {strides = array<i32>} : memref<64x256xf32, #tpu.memory_space<vmem>>, vector<8x256xf32>,
    %c0_338 = arith.constant 0 : index
    %c0_339 = arith.constant 0 : index
    %c44_340 = arith.constant 44 : index
    %286 = vector.load %arg1[%c0_338, %c0_339, %c44_340] : memref<1x8x384xf32, #tpu.memory_space<vmem>>, vector<1x8x256xf32>
    %287 = vector.shape_cast %286 : vector<1x8x256xf32> to vector<8x256xf32>
    %c8_341 = arith.constant 8 : index
    %c0_342 = arith.constant 0 : index
    %288 = vector.load %arg5[%c8_341, %c0_342] : memref<64x256xf32, #tpu.memory_space<vmem>>, vector<8x256xf32>
    tpu.vector_store %arg5[%c8_341, %c0_342], %287 {strides = array<i32>} : memref<64x256xf32, #tpu.memory_space<vmem>>, vector<8x256xf32>,
    %c0_343 = arith.constant 0 : index
    %c0_344 = arith.constant 0 : index
    %c49_345 = arith.constant 49 : index
    %289 = vector.load %arg1[%c0_343, %c0_344, %c49_345] : memref<1x8x384xf32, #tpu.memory_space<vmem>>, vector<1x8x256xf32>
    %290 = vector.shape_cast %289 : vector<1x8x256xf32> to vector<8x256xf32>
    %c16_346 = arith.constant 16 : index
    %c0_347 = arith.constant 0 : index
    %291 = vector.load %arg5[%c16_346, %c0_347] : memref<64x256xf32, #tpu.memory_space<vmem>>, vector<8x256xf32>
    tpu.vector_store %arg5[%c16_346, %c0_347], %290 {strides = array<i32>} : memref<64x256xf32, #tpu.memory_space<vmem>>, vector<8x256xf32>,
    %c0_348 = arith.constant 0 : index
    %c0_349 = arith.constant 0 : index
    %c50_350 = arith.constant 50 : index
    %292 = vector.load %arg1[%c0_348, %c0_349, %c50_350] : memref<1x8x384xf32, #tpu.memory_space<vmem>>, vector<1x8x256xf32>
    %293 = vector.shape_cast %292 : vector<1x8x256xf32> to vector<8x256xf32>
    %c24_351 = arith.constant 24 : index
    %c0_352 = arith.constant 0 : index
    %294 = vector.load %arg5[%c24_351, %c0_352] : memref<64x256xf32, #tpu.memory_space<vmem>>, vector<8x256xf32>
    tpu.vector_store %arg5[%c24_351, %c0_352], %293 {strides = array<i32>} : memref<64x256xf32, #tpu.memory_space<vmem>>, vector<8x256xf32>,
    %c0_353 = arith.constant 0 : index
    %c0_354 = arith.constant 0 : index
    %c79_355 = arith.constant 79 : index
    %295 = vector.load %arg1[%c0_353, %c0_354, %c79_355] : memref<1x8x384xf32, #tpu.memory_space<vmem>>, vector<1x8x256xf32>
    %296 = vector.shape_cast %295 : vector<1x8x256xf32> to vector<8x256xf32>
    %c32_356 = arith.constant 32 : index
    %c0_357 = arith.constant 0 : index
    %297 = vector.load %arg5[%c32_356, %c0_357] : memref<64x256xf32, #tpu.memory_space<vmem>>, vector<8x256xf32>
    tpu.vector_store %arg5[%c32_356, %c0_357], %296 {strides = array<i32>} : memref<64x256xf32, #tpu.memory_space<vmem>>, vector<8x256xf32>,
    %c0_358 = arith.constant 0 : index
    %c0_359 = arith.constant 0 : index
    %c80_360 = arith.constant 80 : index
    %298 = vector.load %arg1[%c0_358, %c0_359, %c80_360] : memref<1x8x384xf32, #tpu.memory_space<vmem>>, vector<1x8x256xf32>
    %299 = vector.shape_cast %298 : vector<1x8x256xf32> to vector<8x256xf32>
    %c40_361 = arith.constant 40 : index
    %c0_362 = arith.constant 0 : index
    %300 = vector.load %arg5[%c40_361, %c0_362] : memref<64x256xf32, #tpu.memory_space<vmem>>, vector<8x256xf32>
    tpu.vector_store %arg5[%c40_361, %c0_362], %299 {strides = array<i32>} : memref<64x256xf32, #tpu.memory_space<vmem>>, vector<8x256xf32>,
    %c0_363 = arith.constant 0 : index
    %c0_364 = arith.constant 0 : index
    %c85_365 = arith.constant 85 : index
    %301 = vector.load %arg1[%c0_363, %c0_364, %c85_365] : memref<1x8x384xf32, #tpu.memory_space<vmem>>, vector<1x8x256xf32>
    %302 = vector.shape_cast %301 : vector<1x8x256xf32> to vector<8x256xf32>
    %c48_366 = arith.constant 48 : index
    %c0_367 = arith.constant 0 : index
    %303 = vector.load %arg5[%c48_366, %c0_367] : memref<64x256xf32, #tpu.memory_space<vmem>>, vector<8x256xf32>
    tpu.vector_store %arg5[%c48_366, %c0_367], %302 {strides = array<i32>} : memref<64x256xf32, #tpu.memory_space<vmem>>, vector<8x256xf32>,
    %c0_368 = arith.constant 0 : index
    %c0_369 = arith.constant 0 : index
    %c86 = arith.constant 86 : index
    %304 = vector.load %arg1[%c0_368, %c0_369, %c86] : memref<1x8x384xf32, #tpu.memory_space<vmem>>, vector<1x8x256xf32>
    %305 = vector.shape_cast %304 : vector<1x8x256xf32> to vector<8x256xf32>
    %c56_370 = arith.constant 56 : index
    %c0_371 = arith.constant 0 : index
    %306 = vector.load %arg5[%c56_370, %c0_371] : memref<64x256xf32, #tpu.memory_space<vmem>>, vector<8x256xf32>
    tpu.vector_store %arg5[%c56_370, %c0_371], %305 {strides = array<i32>} : memref<64x256xf32, #tpu.memory_space<vmem>>, vector<8x256xf32>,
    %c7_372 = arith.constant 7 : index
    %c0_373 = arith.constant 0 : index
    %c0_374 = arith.constant 0 : index
    %307 = vector.load %arg3[%c7_372, %c0_373, %c0_374] : memref<8x8x64xf32, #tpu.memory_space<vmem>>, vector<1x8x64xf32>
    %308 = vector.shape_cast %307 : vector<1x8x64xf32> to vector<8x64xf32>
    %c0_375 = arith.constant 0 : index
    %c0_376 = arith.constant 0 : index
    %309 = vector.load %arg5[%c0_375, %c0_376] : memref<64x256xf32, #tpu.memory_space<vmem>>, vector<64x256xf32>
    %cst_377 = arith.constant dense<0.000000e+00> : vector<8x256xf32>
    %310 = tpu.matmul %308, %309, %cst_377 {dimension_numbers = #tpu.dot_dimension_numbers<[1], [0], [0], [1], [0, 0, 1, 1], [], []>} : vector<8x64xf32>, vector<64x256xf32>, vector<8x256xf32> -> vector<8x256xf32>
    %311 = vector.broadcast %0 : vector<1x256xf32> to vector<8x256xf32>
    %312 = arith.mulf %310, %311 : vector<8x256xf32>
    %cst_378 = arith.constant dense<0.000000e+00> : vector<8xf32>
    %313 = vector.multi_reduction <add>, %312, %cst_378 [1] : vector<8x256xf32> to vector<8xf32>
    %314 = vector.shape_cast %313 : vector<8xf32> to vector<8x1xf32>
    %315 = arith.addf %275, %314 : vector<8x1xf32>
    %316 = arith.mulf %312, %312 : vector<8x256xf32>
    %cst_379 = arith.constant dense<0.000000e+00> : vector<8xf32>
    %317 = vector.multi_reduction <add>, %316, %cst_379 [1] : vector<8x256xf32> to vector<8xf32>
    %318 = vector.shape_cast %317 : vector<8xf32> to vector<8x1xf32>
    %319 = arith.addf %279, %318 : vector<8x1xf32>
    %c0_380 = arith.constant 0 : index
    %c7_381 = arith.constant 7 : index
    %c0_382 = arith.constant 0 : index
    %c0_383 = arith.constant 0 : index
    %320 = vector.load %arg4[%c0_380, %c7_381, %c0_382, %c0_383] : memref<1x8x8x256xf32, #tpu.memory_space<vmem>>, vector<1x1x8x256xf32>
    %321 = vector.shape_cast %320 : vector<1x1x8x256xf32> to vector<8x256xf32>
    %322 = vector.shape_cast %310 : vector<8x256xf32> to vector<1x1x8x256xf32>
    tpu.vector_store %arg4[%c0_380, %c7_381, %c0_382, %c0_383], %322 {strides = array<i32>} : memref<1x8x8x256xf32, #tpu.memory_space<vmem>>, vector<1x1x8x256xf32>,
    %cst_384 = arith.constant 0.001953125 : f32
    %323 = vector.broadcast %cst_384 : f32 to vector<8x1xf32>
    %324 = arith.mulf %315, %323 : vector<8x1xf32>
    %cst_385 = arith.constant 0.001953125 : f32
    %325 = vector.broadcast %cst_385 : f32 to vector<8x1xf32>
    %326 = arith.mulf %319, %325 : vector<8x1xf32>
    %327 = arith.mulf %324, %324 : vector<8x1xf32>
    %328 = arith.subf %326, %327 : vector<8x1xf32>
    %cst_386 = arith.constant 0.000000e+00 : f32
    %329 = vector.broadcast %cst_386 : f32 to vector<8x1xf32>
    %330 = arith.maximumf %328, %329 : vector<8x1xf32>
    %cst_387 = arith.constant 9.99999974E-6 : f32
    %331 = vector.broadcast %cst_387 : f32 to vector<8x1xf32>
    %332 = arith.addf %330, %331 : vector<8x1xf32>
    %333 = math.rsqrt %332 : vector<8x1xf32>
    %c0_388 = arith.constant 0 : index
    %c0_389 = arith.constant 0 : index
    %c0_390 = arith.constant 0 : index
    %c0_391 = arith.constant 0 : index
    %334 = vector.load %arg4[%c0_388, %c0_389, %c0_390, %c0_391] : memref<1x8x8x256xf32, #tpu.memory_space<vmem>>, vector<1x1x8x256xf32>
    %335 = vector.shape_cast %334 : vector<1x1x8x256xf32> to vector<8x256xf32>
    %336 = vector.broadcast %324 : vector<8x1xf32> to vector<8x256xf32>
    %337 = arith.subf %335, %336 : vector<8x256xf32>
    %338 = vector.broadcast %333 : vector<8x1xf32> to vector<8x256xf32>
    %339 = arith.mulf %337, %338 : vector<8x256xf32>
    %cst_392 = arith.constant 0.000000e+00 : f32
    %340 = vector.broadcast %cst_392 : f32 to vector<8x256xf32>
    %341 = arith.cmpf oge, %339, %340 : vector<8x256xf32>
    %cst_393 = arith.constant 0.00999999977 : f32
    %342 = vector.broadcast %cst_393 : f32 to vector<8x256xf32>
    %343 = arith.mulf %342, %339 : vector<8x256xf32>
    %344 = arith.select %341, %339, %343 : vector<8x256xi1>, vector<8x256xf32>
    %c0_394 = arith.constant 0 : index
    %c0_395 = arith.constant 0 : index
    %c0_396 = arith.constant 0 : index
    %c0_397 = arith.constant 0 : index
    %345 = vector.load %arg4[%c0_394, %c0_395, %c0_396, %c0_397] : memref<1x8x8x256xf32, #tpu.memory_space<vmem>>, vector<1x1x8x256xf32>
    %346 = vector.shape_cast %345 : vector<1x1x8x256xf32> to vector<8x256xf32>
    %347 = vector.shape_cast %344 : vector<8x256xf32> to vector<1x1x8x256xf32>
    tpu.vector_store %arg4[%c0_394, %c0_395, %c0_396, %c0_397], %347 {strides = array<i32>} : memref<1x8x8x256xf32, #tpu.memory_space<vmem>>, vector<1x1x8x256xf32>,
    %c0_398 = arith.constant 0 : index
    %c1_399 = arith.constant 1 : index
    %c0_400 = arith.constant 0 : index
    %c0_401 = arith.constant 0 : index
    %348 = vector.load %arg4[%c0_398, %c1_399, %c0_400, %c0_401] : memref<1x8x8x256xf32, #tpu.memory_space<vmem>>, vector<1x1x8x256xf32>
    %349 = vector.shape_cast %348 : vector<1x1x8x256xf32> to vector<8x256xf32>
    %350 = vector.broadcast %324 : vector<8x1xf32> to vector<8x256xf32>
    %351 = arith.subf %349, %350 : vector<8x256xf32>
    %352 = vector.broadcast %333 : vector<8x1xf32> to vector<8x256xf32>
    %353 = arith.mulf %351, %352 : vector<8x256xf32>
    %cst_402 = arith.constant 0.000000e+00 : f32
    %354 = vector.broadcast %cst_402 : f32 to vector<8x256xf32>
    %355 = arith.cmpf oge, %353, %354 : vector<8x256xf32>
    %cst_403 = arith.constant 0.00999999977 : f32
    %356 = vector.broadcast %cst_403 : f32 to vector<8x256xf32>
    %357 = arith.mulf %356, %353 : vector<8x256xf32>
    %358 = arith.select %355, %353, %357 : vector<8x256xi1>, vector<8x256xf32>
    %c0_404 = arith.constant 0 : index
    %c1_405 = arith.constant 1 : index
    %c0_406 = arith.constant 0 : index
    %c0_407 = arith.constant 0 : index
    %359 = vector.load %arg4[%c0_404, %c1_405, %c0_406, %c0_407] : memref<1x8x8x256xf32, #tpu.memory_space<vmem>>, vector<1x1x8x256xf32>
    %360 = vector.shape_cast %359 : vector<1x1x8x256xf32> to vector<8x256xf32>
    %361 = vector.shape_cast %358 : vector<8x256xf32> to vector<1x1x8x256xf32>
    tpu.vector_store %arg4[%c0_404, %c1_405, %c0_406, %c0_407], %361 {strides = array<i32>} : memref<1x8x8x256xf32, #tpu.memory_space<vmem>>, vector<1x1x8x256xf32>,
    %c0_408 = arith.constant 0 : index
    %c2_409 = arith.constant 2 : index
    %c0_410 = arith.constant 0 : index
    %c0_411 = arith.constant 0 : index
    %362 = vector.load %arg4[%c0_408, %c2_409, %c0_410, %c0_411] : memref<1x8x8x256xf32, #tpu.memory_space<vmem>>, vector<1x1x8x256xf32>
    %363 = vector.shape_cast %362 : vector<1x1x8x256xf32> to vector<8x256xf32>
    %364 = vector.broadcast %324 : vector<8x1xf32> to vector<8x256xf32>
    %365 = arith.subf %363, %364 : vector<8x256xf32>
    %366 = vector.broadcast %333 : vector<8x1xf32> to vector<8x256xf32>
    %367 = arith.mulf %365, %366 : vector<8x256xf32>
    %cst_412 = arith.constant 0.000000e+00 : f32
    %368 = vector.broadcast %cst_412 : f32 to vector<8x256xf32>
    %369 = arith.cmpf oge, %367, %368 : vector<8x256xf32>
    %cst_413 = arith.constant 0.00999999977 : f32
    %370 = vector.broadcast %cst_413 : f32 to vector<8x256xf32>
    %371 = arith.mulf %370, %367 : vector<8x256xf32>
    %372 = arith.select %369, %367, %371 : vector<8x256xi1>, vector<8x256xf32>
    %c0_414 = arith.constant 0 : index
    %c2_415 = arith.constant 2 : index
    %c0_416 = arith.constant 0 : index
    %c0_417 = arith.constant 0 : index
    %373 = vector.load %arg4[%c0_414, %c2_415, %c0_416, %c0_417] : memref<1x8x8x256xf32, #tpu.memory_space<vmem>>, vector<1x1x8x256xf32>
    %374 = vector.shape_cast %373 : vector<1x1x8x256xf32> to vector<8x256xf32>
    %375 = vector.shape_cast %372 : vector<8x256xf32> to vector<1x1x8x256xf32>
    tpu.vector_store %arg4[%c0_414, %c2_415, %c0_416, %c0_417], %375 {strides = array<i32>} : memref<1x8x8x256xf32, #tpu.memory_space<vmem>>, vector<1x1x8x256xf32>,
    %c0_418 = arith.constant 0 : index
    %c3_419 = arith.constant 3 : index
    %c0_420 = arith.constant 0 : index
    %c0_421 = arith.constant 0 : index
    %376 = vector.load %arg4[%c0_418, %c3_419, %c0_420, %c0_421] : memref<1x8x8x256xf32, #tpu.memory_space<vmem>>, vector<1x1x8x256xf32>
    %377 = vector.shape_cast %376 : vector<1x1x8x256xf32> to vector<8x256xf32>
    %378 = vector.broadcast %324 : vector<8x1xf32> to vector<8x256xf32>
    %379 = arith.subf %377, %378 : vector<8x256xf32>
    %380 = vector.broadcast %333 : vector<8x1xf32> to vector<8x256xf32>
    %381 = arith.mulf %379, %380 : vector<8x256xf32>
    %cst_422 = arith.constant 0.000000e+00 : f32
    %382 = vector.broadcast %cst_422 : f32 to vector<8x256xf32>
    %383 = arith.cmpf oge, %381, %382 : vector<8x256xf32>
    %cst_423 = arith.constant 0.00999999977 : f32
    %384 = vector.broadcast %cst_423 : f32 to vector<8x256xf32>
    %385 = arith.mulf %384, %381 : vector<8x256xf32>
    %386 = arith.select %383, %381, %385 : vector<8x256xi1>, vector<8x256xf32>
    %c0_424 = arith.constant 0 : index
    %c3_425 = arith.constant 3 : index
    %c0_426 = arith.constant 0 : index
    %c0_427 = arith.constant 0 : index
    %387 = vector.load %arg4[%c0_424, %c3_425, %c0_426, %c0_427] : memref<1x8x8x256xf32, #tpu.memory_space<vmem>>, vector<1x1x8x256xf32>
    %388 = vector.shape_cast %387 : vector<1x1x8x256xf32> to vector<8x256xf32>
    %389 = vector.shape_cast %386 : vector<8x256xf32> to vector<1x1x8x256xf32>
    tpu.vector_store %arg4[%c0_424, %c3_425, %c0_426, %c0_427], %389 {strides = array<i32>} : memref<1x8x8x256xf32, #tpu.memory_space<vmem>>, vector<1x1x8x256xf32>,
    %c0_428 = arith.constant 0 : index
    %c4_429 = arith.constant 4 : index
    %c0_430 = arith.constant 0 : index
    %c0_431 = arith.constant 0 : index
    %390 = vector.load %arg4[%c0_428, %c4_429, %c0_430, %c0_431] : memref<1x8x8x256xf32, #tpu.memory_space<vmem>>, vector<1x1x8x256xf32>
    %391 = vector.shape_cast %390 : vector<1x1x8x256xf32> to vector<8x256xf32>
    %392 = vector.broadcast %324 : vector<8x1xf32> to vector<8x256xf32>
    %393 = arith.subf %391, %392 : vector<8x256xf32>
    %394 = vector.broadcast %333 : vector<8x1xf32> to vector<8x256xf32>
    %395 = arith.mulf %393, %394 : vector<8x256xf32>
    %cst_432 = arith.constant 0.000000e+00 : f32
    %396 = vector.broadcast %cst_432 : f32 to vector<8x256xf32>
    %397 = arith.cmpf oge, %395, %396 : vector<8x256xf32>
    %cst_433 = arith.constant 0.00999999977 : f32
    %398 = vector.broadcast %cst_433 : f32 to vector<8x256xf32>
    %399 = arith.mulf %398, %395 : vector<8x256xf32>
    %400 = arith.select %397, %395, %399 : vector<8x256xi1>, vector<8x256xf32>
    %c0_434 = arith.constant 0 : index
    %c4_435 = arith.constant 4 : index
    %c0_436 = arith.constant 0 : index
    %c0_437 = arith.constant 0 : index
    %401 = vector.load %arg4[%c0_434, %c4_435, %c0_436, %c0_437] : memref<1x8x8x256xf32, #tpu.memory_space<vmem>>, vector<1x1x8x256xf32>
    %402 = vector.shape_cast %401 : vector<1x1x8x256xf32> to vector<8x256xf32>
    %403 = vector.shape_cast %400 : vector<8x256xf32> to vector<1x1x8x256xf32>
    tpu.vector_store %arg4[%c0_434, %c4_435, %c0_436, %c0_437], %403 {strides = array<i32>} : memref<1x8x8x256xf32, #tpu.memory_space<vmem>>, vector<1x1x8x256xf32>,
    %c0_438 = arith.constant 0 : index
    %c5_439 = arith.constant 5 : index
    %c0_440 = arith.constant 0 : index
    %c0_441 = arith.constant 0 : index
    %404 = vector.load %arg4[%c0_438, %c5_439, %c0_440, %c0_441] : memref<1x8x8x256xf32, #tpu.memory_space<vmem>>, vector<1x1x8x256xf32>
    %405 = vector.shape_cast %404 : vector<1x1x8x256xf32> to vector<8x256xf32>
    %406 = vector.broadcast %324 : vector<8x1xf32> to vector<8x256xf32>
    %407 = arith.subf %405, %406 : vector<8x256xf32>
    %408 = vector.broadcast %333 : vector<8x1xf32> to vector<8x256xf32>
    %409 = arith.mulf %407, %408 : vector<8x256xf32>
    %cst_442 = arith.constant 0.000000e+00 : f32
    %410 = vector.broadcast %cst_442 : f32 to vector<8x256xf32>
    %411 = arith.cmpf oge, %409, %410 : vector<8x256xf32>
    %cst_443 = arith.constant 0.00999999977 : f32
    %412 = vector.broadcast %cst_443 : f32 to vector<8x256xf32>
    %413 = arith.mulf %412, %409 : vector<8x256xf32>
    %414 = arith.select %411, %409, %413 : vector<8x256xi1>, vector<8x256xf32>
    %c0_444 = arith.constant 0 : index
    %c5_445 = arith.constant 5 : index
    %c0_446 = arith.constant 0 : index
    %c0_447 = arith.constant 0 : index
    %415 = vector.load %arg4[%c0_444, %c5_445, %c0_446, %c0_447] : memref<1x8x8x256xf32, #tpu.memory_space<vmem>>, vector<1x1x8x256xf32>
    %416 = vector.shape_cast %415 : vector<1x1x8x256xf32> to vector<8x256xf32>
    %417 = vector.shape_cast %414 : vector<8x256xf32> to vector<1x1x8x256xf32>
    tpu.vector_store %arg4[%c0_444, %c5_445, %c0_446, %c0_447], %417 {strides = array<i32>} : memref<1x8x8x256xf32, #tpu.memory_space<vmem>>, vector<1x1x8x256xf32>,
    %c0_448 = arith.constant 0 : index
    %c6_449 = arith.constant 6 : index
    %c0_450 = arith.constant 0 : index
    %c0_451 = arith.constant 0 : index
    %418 = vector.load %arg4[%c0_448, %c6_449, %c0_450, %c0_451] : memref<1x8x8x256xf32, #tpu.memory_space<vmem>>, vector<1x1x8x256xf32>
    %419 = vector.shape_cast %418 : vector<1x1x8x256xf32> to vector<8x256xf32>
    %420 = vector.broadcast %324 : vector<8x1xf32> to vector<8x256xf32>
    %421 = arith.subf %419, %420 : vector<8x256xf32>
    %422 = vector.broadcast %333 : vector<8x1xf32> to vector<8x256xf32>
    %423 = arith.mulf %421, %422 : vector<8x256xf32>
    %cst_452 = arith.constant 0.000000e+00 : f32
    %424 = vector.broadcast %cst_452 : f32 to vector<8x256xf32>
    %425 = arith.cmpf oge, %423, %424 : vector<8x256xf32>
    %cst_453 = arith.constant 0.00999999977 : f32
    %426 = vector.broadcast %cst_453 : f32 to vector<8x256xf32>
    %427 = arith.mulf %426, %423 : vector<8x256xf32>
    %428 = arith.select %425, %423, %427 : vector<8x256xi1>, vector<8x256xf32>
    %c0_454 = arith.constant 0 : index
    %c6_455 = arith.constant 6 : index
    %c0_456 = arith.constant 0 : index
    %c0_457 = arith.constant 0 : index
    %429 = vector.load %arg4[%c0_454, %c6_455, %c0_456, %c0_457] : memref<1x8x8x256xf32, #tpu.memory_space<vmem>>, vector<1x1x8x256xf32>
    %430 = vector.shape_cast %429 : vector<1x1x8x256xf32> to vector<8x256xf32>
    %431 = vector.shape_cast %428 : vector<8x256xf32> to vector<1x1x8x256xf32>
    tpu.vector_store %arg4[%c0_454, %c6_455, %c0_456, %c0_457], %431 {strides = array<i32>} : memref<1x8x8x256xf32, #tpu.memory_space<vmem>>, vector<1x1x8x256xf32>,
    %c0_458 = arith.constant 0 : index
    %c7_459 = arith.constant 7 : index
    %c0_460 = arith.constant 0 : index
    %c0_461 = arith.constant 0 : index
    %432 = vector.load %arg4[%c0_458, %c7_459, %c0_460, %c0_461] : memref<1x8x8x256xf32, #tpu.memory_space<vmem>>, vector<1x1x8x256xf32>
    %433 = vector.shape_cast %432 : vector<1x1x8x256xf32> to vector<8x256xf32>
    %434 = vector.broadcast %324 : vector<8x1xf32> to vector<8x256xf32>
    %435 = arith.subf %433, %434 : vector<8x256xf32>
    %436 = vector.broadcast %333 : vector<8x1xf32> to vector<8x256xf32>
    %437 = arith.mulf %435, %436 : vector<8x256xf32>
    %cst_462 = arith.constant 0.000000e+00 : f32
    %438 = vector.broadcast %cst_462 : f32 to vector<8x256xf32>
    %439 = arith.cmpf oge, %437, %438 : vector<8x256xf32>
    %cst_463 = arith.constant 0.00999999977 : f32
    %440 = vector.broadcast %cst_463 : f32 to vector<8x256xf32>
    %441 = arith.mulf %440, %437 : vector<8x256xf32>
    %442 = arith.select %439, %437, %441 : vector<8x256xi1>, vector<8x256xf32>
    %c0_464 = arith.constant 0 : index
    %c7_465 = arith.constant 7 : index
    %c0_466 = arith.constant 0 : index
    %c0_467 = arith.constant 0 : index
    %443 = vector.load %arg4[%c0_464, %c7_465, %c0_466, %c0_467] : memref<1x8x8x256xf32, #tpu.memory_space<vmem>>, vector<1x1x8x256xf32>
    %444 = vector.shape_cast %443 : vector<1x1x8x256xf32> to vector<8x256xf32>
    %445 = vector.shape_cast %442 : vector<8x256xf32> to vector<1x1x8x256xf32>
    tpu.vector_store %arg4[%c0_464, %c7_465, %c0_466, %c0_467], %445 {strides = array<i32>} : memref<1x8x8x256xf32, #tpu.memory_space<vmem>>, vector<1x1x8x256xf32>,
    return
  }
  func.func @transform_0(%arg0: i32) -> (i32, i32, i32) {
    %c0_i32 = arith.constant 0 : i32
    %c0_i32_0 = arith.constant 0 : i32
    %c0_i32_1 = arith.constant 0 : i32
    return %arg0, %c0_i32, %c0_i32_0 : i32, i32, i32
  }
  func.func @transform_1(%arg0: i32) -> (i32, i32) {
    %c0_i32 = arith.constant 0 : i32
    %c0_i32_0 = arith.constant 0 : i32
    %c0_i32_1 = arith.constant 0 : i32
    return %c0_i32, %c0_i32_0 : i32, i32
  }
  func.func @transform_2(%arg0: i32) -> (i32, i32, i32) {
    %c0_i32 = arith.constant 0 : i32
    %c0_i32_0 = arith.constant 0 : i32
    %c0_i32_1 = arith.constant 0 : i32
    %c0_i32_2 = arith.constant 0 : i32
    return %c0_i32, %c0_i32_0, %c0_i32_1 : i32, i32, i32
  }
  func.func @transform_3(%arg0: i32) -> (i32, i32, i32, i32) {
    %c0_i32 = arith.constant 0 : i32
    %c0_i32_0 = arith.constant 0 : i32
    %c0_i32_1 = arith.constant 0 : i32
    %c0_i32_2 = arith.constant 0 : i32
    return %arg0, %c0_i32, %c0_i32_0, %c0_i32_1 : i32, i32, i32, i32
  }
}

</mosaic_0001>

<bundles_post_ra>
// kernel: up_conv_forward.1
= control target key start
LH: loop header
LB: loop body
LE: loop exit
PB: predicated region body
PF: predicated region fallthrough
CT: control target
= control target key end

     0   :  { %s2748_s12 = smov 0   ;;  %s3542_s0 = inlined_call_operand.vmem [shape: f32[2,8,384], index: 0, kind: input, shape index: {}]   ;;  %s3543_s1 = inlined_call_operand.vmem [shape: f32[1,256], index: 1, kind: input, shape index: {}]   ;;  %s3544_s2 = inlined_call_operand.vmem [shape: f32[8,8,64], index: 2, kind: input, shape index: {}]   ;;  %s3545_s3 = inlined_call_operand.vmem [shape: f32[2,8,8,256], index: 3, kind: output, shape index: {}]  }
   0x1 LB: > { %s2131_s13 = sadd.s32 4294967295, %s2700_s12   ;;  %p2135_p0 = scmp.ge.s32.totalorder %s2700_s12, 1  ;;  %s2700_s12 = sphi %s2748_s12, %s13_s12  }
   0x2   : > { %p137_p1 = scmp.lt.s32.totalorder %s2700_s12, 3 }
   0x4   : > { %p138_p2 = pnand %p2135_p0, %p137_p1 }
   0x5   : > { %p161_p3 = scmp.lt.s32.totalorder (!%p138_p2), %s2131_s13, 1  ;;  %s2702_s18 = smov (!%p138_p2), 121  }
   0x6   : > { %141 = sbr.rel (%p138_p2) target bundleno = 1231 (0x4cf), region = 32  ;;  %s2703_s19 = smov (!%p138_p2), 122  }
   0x7   : > { %s2704_s20 = smov (!%p138_p2), 127   ;;  %s2705_s21 = smov (!%p138_p2), 91  }
   0x8   : > { %s2706_s22 = smov (!%p138_p2), 92   ;;  %s2707_s23 = smov (!%p138_p2), 86  }
   0x9   : > { %s2708_s24 = smov (!%p138_p2), 120   ;;  %s2709_s25 = smov (!%p138_p2), 85  }
   0xa   : > { %s2710_s26 = smov (!%p138_p2), 84   ;;  %s2711_s27 = smov (!%p138_p2), 90  }
   0xb   : > { %s3547_s13 = smov (!%p161_p3, %s2131_s13), 1  ;;  %s2712_s28 = smov 115   ;;  %vm530_vm0 = vcmask 687104   ;;  %vm302_vm1 = vcmask 695296   ;;  %vm283_vm2 = vcmask 703488   ;;  %vm264_vm3 = vcmask 744448  }
   0xc   : > { %s2207_s14 = smul.u32 24, %s3547_s13  ;;  %s2713_s29 = smov 126   ;;  %vm245_vm4 = vcmask 752640   ;;  %vm226_vm5 = vcmask 990208   ;;  %vm188_vm6 = vcmask 1039360   ;;  %vm207_vm7 = vcmask 998400  }
   0xd   : > { %s2714_s30 = smov 80   ;;  %s2715_s4 = smov 79   ;;  %vm456_vm8 = vcmask 982016   ;;  %vm680_vm9 = vcmask 941056   ;;  %vm326_vm10 = vcmask 523264   ;;  %vm493_vm11 = vcmask 736256  }
   0xe   : > { %s2762_s17 = scalar_lea.vmem %s3542_s0, %s2207_s14  ;;  %s2716_s5 = smov 116   ;;  %vm419_vm12 = vcmask 1031168   ;;  %vm976_vm13 = vcmask 637952   ;;  %vm754_vm14 = vcmask 646144   ;;  %vm735_vm15 = vcmask 654336  }
   0xf   : > { %v2765_v0 = vld [vmem:[%s2762_s17] sm:$0xff]  ;;  %v2768_v1 = vld [vmem:[%s2762_s17 + $0x8] sm:$0xff]  ;;  %v2780_v3 = vld [vmem:[%s2762_s17 + $0x10] sm:$0xff]  ;;  %s2717_s6 = smov 114   ;;  %s2718_s7 = smov 78  }
  0x10   : > { %v2772_v2 = vpack.i.bf16 %v2768_v1, %v2765_v0  ;;  %v2784_v4 = vpack.i.bf16 %v2765_v0, %v2780_v3  ;;  %v2312_v5 = vpack.i.bf16 %v2780_v3, %v2768_v1  ;;  %s2206_s10 = sshll.u32 %s3547_s13, 7 }
  0x11   : > { %s3510_s14 = scalar_lea.vmem %s3545_s3, %s2206_s10 }
  0x12   : > { %2263 = vrot.lane.b32.xlu2 %v2772_v2, %s2702_s18  ;;  %2253 = vrot.lane.b32.xlu1 %v2772_v2, %s2703_s19 }
  0x13   : > { %2243 = vrot.lane.b32.xlu0 %v2772_v2, %s2704_s20 }
  0x1a   : > { %2268 = vrot.lane.b32.xlu2 %v2784_v4, %s2702_s18  ;;  %2258 = vrot.lane.b32.xlu1 %v2784_v4, %s2703_s19 }
  0x1b   : > { %2248 = vrot.lane.b32.xlu0 %v2784_v4, %s2704_s20 }
  0x22   : > { %2283 = vrot.lane.b32.xlu2 %v2772_v2, %s2705_s21  ;;  %2278 = vrot.lane.b32.xlu1 %v2784_v4, %s2706_s22 }
  0x23   : > { %2273 = vrot.lane.b32.xlu0 %v2772_v2, %s2706_s22 }
  0x2a   : > { %2298 = vrot.lane.b32.xlu2 %v2784_v4, %s2707_s23  ;;  %2293 = vrot.lane.b32.xlu1 %v2772_v2, %s2707_s23 }
  0x2b   : > { %2288 = vrot.lane.b32.xlu0 %v2784_v4, %s2705_s21 }
  0x32   : > { %2333 = vrot.lane.b32.xlu2 %v2784_v4, %s2708_s24  ;;  %2308 = vrot.lane.b32.xlu1 %v2784_v4, %s2709_s25 }
  0x33   : > { %2303 = vrot.lane.b32.xlu0 %v2772_v2, %s2709_s25 }
  0x3a   : > { %2358 = vrot.lane.b32.xlu2 %v2772_v2, %s2710_s26  ;;  %2313 = vrot.lane.b32.xlu1 %v2312_v5, %s2704_s20 }
  0x3b   : > { %2343 = vrot.lane.b32.xlu0 %v2772_v2, %s2711_s27 }
  0x42   : > { %2393 = vrot.lane.b32.xlu2 %v2784_v4, %s2712_s28  ;;  %2318 = vrot.lane.b32.xlu1 %v2772_v2, %s2713_s29 }
  0x43   : > { %2363 = vrot.lane.b32.xlu0 %v2784_v4, %s2710_s26 }
  0x4a   : > { %2413 = vrot.lane.b32.xlu2 %v2772_v2, %s2714_s30  ;;  %417 = vrot.lane.b32.xlu1 %v2780_v3, %s2713_s29  ;;  %s2723_s29 = smov 48  }
  0x4b   : > { %2368 = vrot.lane.b32.xlu0 %v2312_v5, %s2703_s19 }
  0x52   : > { %2428 = vrot.lane.b32.xlu2 %v2784_v4, %s2715_s4  ;;  %2323 = vrot.lane.b32.xlu1 %v2312_v5, %s2702_s18 }
  0x53   : > { %2373 = vrot.lane.b32.xlu0 %v2772_v2, %s2702_s18 }
  0x5a   : > { %2433 = vrot.lane.b32.xlu2 %v2312_v5, %s2702_s18  ;;  %2328 = vrot.lane.b32.xlu1 %v2772_v2, %s2708_s24 }
  0x5b   : > { %2378 = vrot.lane.b32.xlu0 %v2784_v4, %s2702_s18 }
  0x62   : > { %2438 = vrot.lane.b32.xlu2 %v2312_v5, %s2708_s24  ;;  %2338 = vrot.lane.b32.xlu1 %v2312_v5, %s2705_s21  ;;  %s2721_s24 = smov 49  }
  0x63   : > { %2383 = vrot.lane.b32.xlu0 %v2772_v2, %s2716_s5 }
  0x6a   : > { %2443 = vrot.lane.b32.xlu2 %v2312_v5, %s2712_s28  ;;  %2348 = vrot.lane.b32.xlu1 %v2784_v4, %s2711_s27 }
  0x6b   : > { %659 = vrot.lane.b32.xlu0 %v2780_v3, %s2716_s5  ;;  %s2724_s5 = smov 54  }
  0x6c   : > { %v2838_v6 = vpop.permute.xlu2 %2263 }
  0x6d   : > { %v2266_v43 = vunpack.i.h.bf16 %v2838_v6  ;;  %v2265_v44 = vunpack.i.l.bf16 %v2838_v6 }
  0x6f   : > { %v227_v58 = vsel %vm226_vm5, %v2265_v44, %v2266_v43  ;;  %v309_v44 = vld [vmem:[%s3544_s2] sm:$0xff] }
  0x72   : > { %2448 = vrot.lane.b32.xlu2 %v2772_v2, %s2717_s6  ;;  %2353 = vrot.lane.b32.xlu1 %v2312_v5, %s2709_s25 }
  0x73   : > { %2398 = vrot.lane.b32.xlu0 %v2312_v5, %s2707_s23 }
  0x74   : > { %v2843_v7 = vpop.permute.xlu2 %2268 }
  0x75   : > { %v2270_v45 = vunpack.i.l.bf16 %v2843_v7 }
  0x77   : > { %v228_v63 = vsel %vm226_vm5, %v2266_v43, %v2270_v45 }
  0x7a   : > { %901 = vrot.lane.b32.xlu2 %v2780_v3, %s2717_s6  ;;  %2388 = vrot.lane.b32.xlu1 %v2772_v2, %s2712_s28  ;;  %s2722_s28 = smov 50   ;;  %s2725_s6 = smov 42  }
  0x7b   : > { %2403 = vrot.lane.b32.xlu0 %v2772_v2, %s2709_s25 }
  0x7c   : > { %v2850_v8 = vpop.permute.xlu2 %2283 }
  0x7d   : > { %v2286_v32 = vunpack.i.h.bf16 %v2850_v8  ;;  %v2285_v33 = vunpack.i.l.bf16 %v2850_v8 }
  0x7f   : > { %v265_v48 = vsel %vm264_vm3, %v2285_v33, %v2286_v32 }
  0x82   : > { %2463 = vrot.lane.b32.xlu2 %v2312_v5, %s2715_s4  ;;  %2418 = vrot.lane.b32.xlu1 %v2784_v4, %s2714_s30 }
  0x83   : > { %2408 = vrot.lane.b32.xlu0 %v2784_v4, %s2709_s25 }
  0x84   : > { %v2857_v9 = vpop.permute.xlu2 %2298  ;;  %v2859_v10 = vpop.permute.xlu1 %2253 }
  0x85   : > { %v2861_v11 = vpop.permute.xlu0 %2243  ;;  %v2300_v34 = vunpack.i.l.bf16 %v2857_v9  ;;  %v2256_v50 = vunpack.i.h.bf16 %v2859_v10  ;;  %v2255_v54 = vunpack.i.l.bf16 %v2859_v10 }
  0x86   : > { %v2246_v60 = vunpack.i.h.bf16 %v2861_v11  ;;  %v2245_v61 = vunpack.i.l.bf16 %v2861_v11 }
  0x88   : > { %v189_v8 = vsel %vm188_vm6, %v2245_v61, %v2246_v60 }
  0x8a   : > { %2468 = vrot.lane.b32.xlu2 %v2772_v2, %s2718_s7  ;;  %2453 = vrot.lane.b32.xlu1 %v2312_v5, %s2709_s25 }
  0x8b   : > { %2423 = vrot.lane.b32.xlu0 %v2772_v2, %s2715_s4  ;;  %v208_v2 = vsel %vm207_vm7, %v2255_v54, %v2256_v50 }
  0x8c   : > { %v2868_v12 = vpop.permute.xlu2 %2333  ;;  %v2870_v13 = vpop.permute.xlu1 %2258 }
  0x8d   : > { %v2872_v14 = vpop.permute.xlu0 %2248  ;;  %v2260_v55 = vunpack.i.l.bf16 %v2870_v13 }
  0x8e   : > { %v2251_v51 = vunpack.i.h.bf16 %v2872_v14  ;;  %v2250_v62 = vunpack.i.l.bf16 %v2872_v14 }
  0x90   : > { %v190_v10 = vsel %vm188_vm6, %v2246_v60, %v2250_v62 }
  0x92   : > { %2473 = vrot.lane.b32.xlu2 %v2784_v4, %s2718_s7  ;;  %v209_v4 = vsel %vm207_vm7, %v2256_v50, %v2260_v55 }
  0x93   : > { %2458 = vrot.lane.b32.xlu0 %v2312_v5, %s2710_s26 }
  0x94   : > { %v2877_v15 = vpop.permute.xlu2 %2358  ;;  %v2879_v16 = vpop.permute.xlu1 %2278 }
  0x95   : > { %v2361_v17 = vunpack.i.h.bf16 %v2877_v15  ;;  %v2360_v18 = vunpack.i.l.bf16 %v2877_v15  ;;  %v2274_v19 = vpop.permute.xlu0 %2273  ;;  %v2280_v39 = vunpack.i.l.bf16 %v2879_v16 }
  0x96   : > { %v2276_v40 = vunpack.i.h.bf16 %v2274_v19  ;;  %v2275_v41 = vunpack.i.l.bf16 %v2274_v19 }
  0x97   : > { %v531_v20 = vsel %vm530_vm0, %v2360_v18, %v2361_v17 }
  0x98   : > { %566 = vmatpush.msra.mxu2 %v531_v20  ;;  %v246_v56 = vsel %vm245_vm4, %v2275_v41, %v2276_v40  ;;  %v247_v57 = vsel %vm245_vm4, %v2276_v40, %v2280_v39 }
  0x9a   : > { %2478 = vrot.lane.b32.xlu2 %v2312_v5, %s2706_s22  ;;  %s2720_s22 = smov 55  }
  0x9c   : > { %v2887_v21 = vpop.permute.xlu2 %2393  ;;  %v2294_v22 = vpop.permute.xlu1 %2293 }
  0x9d   : > { %v2889_v23 = vpop.permute.xlu0 %2288  ;;  %v2295_v24 = vunpack.i.l.bf16 %v2294_v22  ;;  %v2296_v29 = vunpack.i.h.bf16 %v2294_v22  ;;  %v2336_v22 = vunpack.i.h.bf16 %v2868_v12 }
  0x9e   : > { %v2290_v35 = vunpack.i.l.bf16 %v2889_v23 }
  0x9f   : > { %v284_v38 = vsel %vm283_vm2, %v2295_v24, %v2296_v29  ;;  %v285_v42 = vsel %vm283_vm2, %v2296_v29, %v2300_v34 }
  0xa0   : > { %v266_v49 = vsel %vm264_vm3, %v2286_v32, %v2290_v35 }
  0xa4   : > { %v2891_v25 = vpop.permute.xlu2 %2413  ;;  %v2893_v26 = vpop.permute.xlu1 %2308 }
  0xa5   : > { %v2310_v27 = vunpack.i.l.bf16 %v2893_v26  ;;  %v2304_v28 = vpop.permute.xlu0 %2303  ;;  %v2311_v50 = vunpack.i.h.bf16 %v2893_v26  ;;  %v2291_v26 = vunpack.i.h.bf16 %v2889_v23 }
  0xa6   : > { %v2306_v30 = vunpack.i.h.bf16 %v2304_v28  ;;  %v2305_v31 = vunpack.i.l.bf16 %v2304_v28  ;;  %v2261_v28 = vunpack.i.h.bf16 %v2870_v13  ;;  %v2396_v13 = vunpack.i.h.bf16 %v2887_v21 }
  0xa8   : > { %v303_v36 = vsel %vm302_vm1, %v2305_v31, %v2306_v30  ;;  %v304_v37 = vsel %vm302_vm1, %v2306_v30, %v2310_v27 }
  0xa9   : > { %338 = vmatpush.msra.mxu0 %v303_v36  ;;  %358 = vmatpush.msra.mxu1 %v304_v37 }
  0xab   : > { %339 = vmatpush.msra.mxu0 %v284_v38  ;;  %359 = vmatpush.msra.mxu1 %v285_v42 }
  0xac   : > { %v2908_v46 = vpop.permute.xlu2 %2428  ;;  %v2910_v47 = vpop.permute.xlu1 %2313 }
  0xad   : > { %v2315_v52 = vunpack.i.l.bf16 %v2910_v47  ;;  %v2917_v53 = vpop.permute.xlu0 %2343  ;;  %340 = vmatpush.msra.mxu0 %v265_v48  ;;  %360 = vmatpush.msra.mxu1 %v266_v49 }
  0xaf   : > { %341 = vmatpush.msra.mxu0 %v246_v56  ;;  %361 = vmatpush.msra.mxu1 %v247_v57  ;;  %v2927_v59 = vsel %vm188_vm6, %v2251_v51, %v2315_v52  ;;  %v2346_v51 = vunpack.i.h.bf16 %v2917_v53  ;;  %v2345_v56 = vunpack.i.l.bf16 %v2917_v53 }
  0xb1   : > { %342 = vmatpush.msra.mxu0 %v227_v58  ;;  %362 = vmatpush.msra.mxu1 %v228_v63  ;;  %v494_v53 = vsel %vm493_vm11, %v2345_v56, %v2346_v51 }
  0xb3   : > { %343 = vmatpush.msra.mxu0 %v208_v2  ;;  %363 = vmatpush.msra.mxu1 %v209_v4 }
  0xb4   : > { %v2935_v5 = vpop.permute.xlu2 %2433  ;;  %v2937_v6 = vpop.permute.xlu1 %2318 }
  0xb5   : > { %v2941_v11 = vpop.permute.xlu0 %2363  ;;  %344 = vmatpush.msra.mxu0 %v189_v8  ;;  %364 = vmatpush.msra.mxu1 %v190_v10  ;;  %v2435_v38 = vunpack.i.l.bf16 %v2935_v5 }
  0xb6   : > { %v2365_v14 = vunpack.i.l.bf16 %v2941_v11 }
  0xb7   : > { %345 = vmatpush.msra.mxu0 %v2765_v0  ;;  %365 = vmatpush.msra.mxu1 %v2768_v1 }
  0xb8   : > { %v532_v18 = vsel %vm530_vm0, %v2361_v17, %v2365_v14  ;;  %2139 = vmatmul.msk.f32.vlgmr.msra.gmra.mxu0 %vm326_vm10, %v309_v44  ;;  %2140 = vmatmul.msk.f32.vlgmr.msra.gmra.mxu1 %vm326_vm10, %v309_v44 }
  0xb9   : > { %586 = vmatpush.msra.mxu3 %v532_v18 }
  0xbc   : > { %v2949_v19 = vpop.permute.xlu2 %2438  ;;  %v2951_v20 = vpop.permute.xlu1 %417 }
  0xbd   : > { %v2440_v24 = vunpack.i.l.bf16 %v2949_v19  ;;  %v2369_v27 = vpop.permute.xlu0 %2368 }
  0xbe   : > { %v2371_v0 = vunpack.i.h.bf16 %v2369_v27  ;;  %v2370_v29 = vunpack.i.l.bf16 %v2369_v27 }
  0xbf   : > { %v2959_v1 = vsel %vm456_vm8, %v2336_v22, %v2440_v24  ;;  %v2335_v22 = vunpack.i.l.bf16 %v2868_v12 }
  0xc0   : > { %v2962_v15 = vsel %vm207_vm7, %v2261_v28, %v2370_v29  ;;  %v2965_v17 = vsel %vm207_vm7, %v2370_v29, %v2371_v0  ;;  %v2271_v0 = vunpack.i.h.bf16 %v2843_v7  ;;  %v2321_v29 = vunpack.i.h.bf16 %v2937_v6 }
  0xc1   : > { %vm903_vm7 = vcmask 932864  }
  0xc4   : > { %v2967_v30 = vpop.permute.xlu2 %2443  ;;  %v2969_v31 = vpop.permute.xlu1 %2323 }
  0xc5   : > { %v2445_v32 = vunpack.i.l.bf16 %v2967_v30  ;;  %v2973_v33 = vpop.permute.xlu0 %2373  ;;  %v2325_v18 = vunpack.i.l.bf16 %v2969_v31  ;;  %v2326_v27 = vunpack.i.h.bf16 %v2969_v31  ;;  %v2316_v31 = vunpack.i.h.bf16 %v2910_v47 }
  0xc6   : > { %v2431_v47 = vunpack.i.h.bf16 %v2908_v46 }
  0xc7   : > { %v2978_v34 = vsel %vm680_vm9, %v2396_v13, %v2445_v32  ;;  %v2320_v13 = vunpack.i.l.bf16 %v2937_v6  ;;  %v438_v7 = vsel %vm226_vm5, %v2271_v0, %v2325_v18  ;;  %v439_v6 = vsel %vm226_vm5, %v2325_v18, %v2326_v27 }
  0xc9   : > { %v420_v56 = vsel %vm419_vm12, %v2320_v13, %v2321_v29 }
  0xcc   : > { %v2980_v35 = vpop.permute.xlu2 %2448  ;;  %v2329_v36 = vpop.permute.xlu1 %2328 }
  0xcd   : > { %v2982_v37 = vpop.permute.xlu0 %2378  ;;  %v2331_v8 = vunpack.i.h.bf16 %v2329_v36  ;;  %v2330_v10 = vunpack.i.l.bf16 %v2329_v36 }
  0xce   : > { %v2381_v39 = vunpack.i.h.bf16 %v2982_v37 }
  0xcf   : > { %v458_v12 = vsel %vm456_vm8, %v2331_v8, %v2335_v22 }
  0xd0   : > { %v2989_v40 = vsel %vm226_vm5, %v2381_v39, %v2435_v38  ;;  %v457_v39 = vsel %vm456_vm8, %v2330_v10, %v2331_v8  ;;  %v2416_v10 = vunpack.i.h.bf16 %v2891_v25 }
  0xd4   : > { %v2991_v41 = vpop.permute.xlu2 %901  ;;  %v2339_v42 = vpop.permute.xlu1 %2338 }
  0xd5   : > { %v2993_v43 = vpop.permute.xlu0 %2383  ;;  %v2341_v62 = vunpack.i.h.bf16 %v2339_v42  ;;  %v2340_v63 = vunpack.i.l.bf16 %v2339_v42 }
  0xd7   : > { %v475_v28 = vsel %vm264_vm3, %v2291_v26, %v2340_v63  ;;  %v476_v23 = vsel %vm264_vm3, %v2340_v63, %v2341_v62 }
  0xdc   : > { %v3000_v45 = vpop.permute.xlu2 %2463  ;;  %v3002_v48 = vpop.permute.xlu1 %2348 }
  0xdd   : > { %v3004_v49 = vpop.permute.xlu0 %659  ;;  %v2350_v57 = vunpack.i.l.bf16 %v3002_v48  ;;  %v2465_v62 = vunpack.i.l.bf16 %v3000_v45 }
  0xdf   : > { %v495_v14 = vsel %vm493_vm11, %v2346_v51, %v2350_v57  ;;  %v421_v57 = vsel %vm419_vm12, %v2321_v29, %v2951_v20  ;;  %vm1143_vm12 = vcmask 457728  }
  0xe4   : > { %v2469_v54 = vpop.permute.xlu2 %2468  ;;  %v2354_v55 = vpop.permute.xlu1 %2353 }
  0xe5   : > { %v2356_v58 = vunpack.i.h.bf16 %v2354_v55  ;;  %v2355_v60 = vunpack.i.l.bf16 %v2354_v55  ;;  %v3010_v61 = vpop.permute.xlu0 %2398  ;;  %v2471_v44 = vunpack.i.h.bf16 %v2469_v54 }
  0xe7   : > { %v512_v2 = vsel %vm302_vm1, %v2311_v50, %v2355_v60  ;;  %v513_v4 = vsel %vm302_vm1, %v2355_v60, %v2356_v58  ;;  %v2470_v50 = vunpack.i.l.bf16 %v2469_v54  ;;  %v402_v54 = vsel %vm188_vm6, %v2315_v52, %v2316_v31  ;;  %v2141_v58 = vld [vmem:[%s3544_s2 + $0x8] sm:$0xff]  ;;  %v3055_v52 = vld [vmem:[%s2762_s17] sm:$0xff] }
  0xe8   : > { %567 = vmatpush.msra.mxu2 %v512_v2  ;;  %587 = vmatpush.msra.mxu3 %v513_v4  ;;  %v2466_v60 = vunpack.i.h.bf16 %v3000_v45  ;;  %v3058_v4 = vld [vmem:[%s2762_s17 + $0x8] sm:$0xff]  ;;  %vm661_vm6 = vcmask 949248  }
  0xe9   : > { %v977_v63 = vsel %vm976_vm13, %v2470_v50, %v2471_v44  ;;  %v3062_v45 = vpack.i.bf16 %v3058_v4, %v3055_v52 }
  0xea   : > { %568 = vmatpush.msra.mxu2 %v494_v53  ;;  %588 = vmatpush.msra.mxu3 %v495_v14  ;;  %v959_v26 = vsel %vm754_vm14, %v2465_v62, %v2466_v60  ;;  %v2415_v53 = vunpack.i.l.bf16 %v2891_v25  ;;  %v2430_v14 = vunpack.i.l.bf16 %v2908_v46  ;;  %v2401_v46 = vunpack.i.h.bf16 %v3010_v61 }
  0xeb   : > { %2483 = vrot.lane.b32.xlu2 %v3062_v45, %s2705_s21 }
  0xec   : > { %569 = vmatpush.msra.mxu2 %v475_v28  ;;  %589 = vmatpush.msra.mxu3 %v476_v23  ;;  %v3030_v42 = vpop.permute.xlu2 %2473  ;;  %v3035_v55 = vpop.permute.xlu1 %2388  ;;  %v2487_v23 = vpack.i.bf16 %v3055_v52, %v2780_v3  ;;  %v736_v31 = vsel %vm735_vm15, %v2415_v53, %v2416_v10  ;;  %v2451_v53 = vunpack.i.h.bf16 %v2980_v35 }
  0xed   : > { %v3025_v36 = vpop.permute.xlu0 %2403  ;;  %v2475_v51 = vunpack.i.l.bf16 %v3030_v42  ;;  %v2391_v50 = vunpack.i.h.bf16 %v3035_v55 }
  0xee   : > { %570 = vmatpush.msra.mxu2 %v457_v39  ;;  %590 = vmatpush.msra.mxu3 %v458_v12  ;;  %v2406_v0 = vunpack.i.h.bf16 %v3025_v36  ;;  %v2405_v29 = vunpack.i.l.bf16 %v3025_v36  ;;  %v2400_v12 = vunpack.i.l.bf16 %v3010_v61  ;;  %v2301_v36 = vunpack.i.h.bf16 %v2857_v9 }
  0xef   : > { %v978_v20 = vsel %vm976_vm13, %v2471_v44, %v2475_v51  ;;  %v2366_v44 = vunpack.i.h.bf16 %v2941_v11  ;;  %v2390_v51 = vunpack.i.l.bf16 %v3035_v55 }
  0xf0   : > { %571 = vmatpush.msra.mxu2 %v438_v7  ;;  %591 = vmatpush.msra.mxu3 %v439_v6  ;;  %v2395_v7 = vunpack.i.l.bf16 %v2887_v21  ;;  %v717_v61 = vsel %vm302_vm1, %v2405_v29, %v2406_v0  ;;  %v699_v60 = vsel %vm283_vm2, %v2301_v36, %v2400_v12  ;;  %v700_v55 = vsel %vm283_vm2, %v2400_v12, %v2401_v46  ;;  %v2146_v29 = vld [vmem:[%s3544_s2 + $0x10] sm:$0xff] }
  0xf2   : > { %572 = vmatpush.msra.mxu2 %v420_v56  ;;  %592 = vmatpush.msra.mxu3 %v421_v57  ;;  %v2386_v57 = vunpack.i.h.bf16 %v2993_v43 }
  0xf3   : > { %2488 = vrot.lane.b32.xlu2 %v2487_v23, %s2705_s21  ;;  %v2441_v23 = vunpack.i.h.bf16 %v2949_v19  ;;  %v171_v19 = vld [vmem:[%s3543_s1] sm:$0x3] }
  0xf4   : > { %573 = vmatpush.msra.mxu2 %v2927_v59  ;;  %593 = vmatpush.msra.mxu3 %v402_v54  ;;  %v958_v59 = vsel %vm754_vm14, %v2431_v47, %v2465_v62  ;;  %v3068_v8 = vpop.permute.xlu1 %2418  ;;  %v2385_v54 = vunpack.i.l.bf16 %v2993_v43  ;;  %v2376_v62 = vunpack.i.h.bf16 %v2973_v33  ;;  %v681_v43 = vsel %vm680_vm9, %v2390_v51, %v2391_v50 }
  0xf5   : > { %v3050_v2 = vpop.permute.xlu0 %2408  ;;  %2142 = vmatmul.msk.f32.vlgmr.msra.gmra.mxu2 %vm326_vm10, %v2141_v58  ;;  %2143 = vmatmul.msk.f32.vlgmr.msra.gmra.mxu3 %vm326_vm10, %v2141_v58  ;;  %v2420_v22 = vunpack.i.l.bf16 %v3068_v8 }
  0xf6   : > { %1012 = vmatpush.msrb.mxu2 %v977_v63  ;;  %1032 = vmatpush.msrb.mxu3 %v978_v20  ;;  %v2410_v13 = vunpack.i.l.bf16 %v3050_v2  ;;  %v2375_v63 = vunpack.i.l.bf16 %v2973_v33  ;;  %v2380_v20 = vunpack.i.l.bf16 %v2982_v37  ;;  %v662_v37 = vsel %vm661_vm6, %v2385_v54, %v2386_v57 }
  0xf7   : > { %v737_v3 = vsel %vm735_vm15, %v2416_v10, %v2420_v22  ;;  %v663_v22 = vsel %vm661_vm6, %v2386_v57, %v3004_v49  ;;  %v905_v49 = vsel %vm903_vm7, %v2451_v53, %v2991_v41  ;;  %v868_v41 = vsel %vm456_vm8, %v2440_v24, %v2441_v23 }
  0xf8   : > { %1013 = vmatpush.msrb.mxu2 %v958_v59  ;;  %1033 = vmatpush.msrb.mxu3 %v959_v26  ;;  %v718_v56 = vsel %vm302_vm1, %v2406_v0, %v2410_v13  ;;  %v682_v59 = vsel %vm680_vm9, %v2391_v50, %v2395_v7  ;;  %v2436_v13 = vunpack.i.h.bf16 %v2935_v5  ;;  %v3147_v24 = vperm.slane %v171_v19, 0 }
  0xf9   : > { %vm1181_vm8 = vcmask 408576   ;;  %vm1422_vm6 = vcmask 392192  }
  0xfb   : > { %2493 = vrot.lane.b32.xlu2 %v3062_v45, %s2707_s23 }
  0xfc   : > { %v2454_v6 = vpop.permute.xlu1 %2453 }
  0xfd   : > { %v2424_v18 = vpop.permute.xlu0 %2423  ;;  %v2456_v9 = vunpack.i.h.bf16 %v2454_v6  ;;  %v2455_v47 = vunpack.i.l.bf16 %v2454_v6  ;;  %v3167_v6 = vpop.permute.xlu2 %2478 }
  0xfe   : > { %v2426_v27 = vunpack.i.h.bf16 %v2424_v18  ;;  %v2425_v28 = vunpack.i.l.bf16 %v2424_v18  ;;  %v2411_v18 = vunpack.i.h.bf16 %v3050_v2  ;;  %v643_v2 = vsel %vm226_vm5, %v2375_v63, %v2376_v62 }
  0xff   : > { %v923_v33 = vsel %vm302_vm1, %v2455_v47, %v2456_v9 }
 0x100   : > { %v755_v39 = vsel %vm754_vm14, %v2425_v28, %v2426_v27  ;;  %v756_v25 = vsel %vm754_vm14, %v2426_v27, %v2430_v14  ;;  %v2450_v14 = vunpack.i.l.bf16 %v2980_v35  ;;  %v2446_v27 = vunpack.i.h.bf16 %v2967_v30 }
 0x101   : > { %790 = vmatpush.msrb.mxu0 %v755_v39  ;;  %810 = vmatpush.msrb.mxu1 %v756_v25  ;;  %v922_v35 = vsel %vm302_vm1, %v2411_v18, %v2455_v47  ;;  %v644_v28 = vsel %vm226_vm5, %v2376_v62, %v2380_v20 }
 0x102   : > { %v904_v0 = vsel %vm903_vm7, %v2450_v14, %v2451_v53  ;;  %v886_v39 = vsel %vm680_vm9, %v2445_v32, %v2446_v27  ;;  %vm1162_vm9 = vcmask 449536   ;;  %vm1865_vm7 = vcmask 343040  }
 0x103   : > { %791 = vmatpush.msrb.mxu0 %v736_v31  ;;  %811 = vmatpush.msrb.mxu1 %v737_v3 }
 0x105   : > { %v2459_v58 = vpop.permute.xlu0 %2458  ;;  %792 = vmatpush.msrb.mxu0 %v717_v61  ;;  %812 = vmatpush.msrb.mxu1 %v718_v56 }
 0x106   : > { %v2461_v21 = vunpack.i.h.bf16 %v2459_v58  ;;  %v2460_v11 = vunpack.i.l.bf16 %v2459_v58 }
 0x107   : > { %793 = vmatpush.msrb.mxu0 %v699_v60  ;;  %813 = vmatpush.msrb.mxu1 %v700_v55  ;;  %v3180_v55 = vld [vmem:[%s2762_s17 + $0x10] sm:$0xff]  ;;  %s2719_s17 = smov 56  }
 0x108   : > { %v940_v26 = vsel %vm530_vm0, %v2366_v44, %v2460_v11  ;;  %v941_v10 = vsel %vm530_vm0, %v2460_v11, %v2461_v21 }
 0x109   : > { %794 = vmatpush.msrb.mxu0 %v681_v43  ;;  %814 = vmatpush.msrb.mxu1 %v682_v59 }
 0x10a   : > { %1014 = vmatpush.msrb.mxu2 %v940_v26  ;;  %1034 = vmatpush.msrb.mxu3 %v941_v10 }
 0x10b   : > { %795 = vmatpush.msrb.mxu0 %v662_v37  ;;  %815 = vmatpush.msrb.mxu1 %v663_v22  ;;  %v3205_v37 = vpack.i.bf16 %v3055_v52, %v3180_v55  ;;  %v3229_v52 = vpack.i.bf16 %v3180_v55, %v3058_v4 }
 0x10c   : > { %1015 = vmatpush.msrb.mxu2 %v922_v35  ;;  %1035 = vmatpush.msrb.mxu3 %v923_v33 }
 0x10d   : > { %796 = vmatpush.msrb.mxu0 %v643_v2  ;;  %816 = vmatpush.msrb.mxu1 %v644_v28 }
 0x10e   : > { %1016 = vmatpush.msrb.mxu2 %v904_v0  ;;  %1036 = vmatpush.msrb.mxu3 %v905_v49 }
 0x10f   : > { %797 = vmatpush.msrb.mxu0 %v2962_v15  ;;  %817 = vmatpush.msrb.mxu1 %v2965_v17  ;;  %v2151_v15 = vld [vmem:[%s3544_s2 + $0x18] sm:$0xff]  ;;  %v850_v17 = vsel %vm226_vm5, %v2435_v38, %v2436_v13  ;;  %vm1200_vm5 = vcmask 400384  }
 0x110   : > { %1017 = vmatpush.msrb.mxu2 %v2978_v34  ;;  %1037 = vmatpush.msrb.mxu3 %v886_v39 }
 0x111   : > { %2147 = vmatmul.msk.f32.vlgmr.msrb.gmra.mxu0 %vm326_vm10, %v2146_v29  ;;  %2148 = vmatmul.msk.f32.vlgmr.msrb.gmra.mxu1 %vm326_vm10, %v2146_v29 }
 0x112   : > { %1018 = vmatpush.msrb.mxu2 %v2959_v1  ;;  %1038 = vmatpush.msrb.mxu3 %v868_v41  ;;  %v3149_v1 = vperm.slane %v171_v19, 1 }
 0x114   : > { %1019 = vmatpush.msrb.mxu2 %v2989_v40  ;;  %1039 = vmatpush.msrb.mxu3 %v850_v17 }
 0x115   : > { %2152 = vmatmul.msk.f32.vlgmr.msrb.gmra.mxu2 %vm326_vm10, %v2151_v15  ;;  %2153 = vmatmul.msk.f32.vlgmr.msrb.gmra.mxu3 %vm326_vm10, %v2151_v15 }
 0x135   : > { %v3151_v5 = vpop.f32.mrf.mxu0  ;;  %v3153_v30 = vpop.f32.mrf.mxu1 }
 0x136   : > { %v375_v32 = vmul.f32 %v3147_v24, %v3151_v5  ;;  %v376_v34 = vmul.f32 %v3149_v1, %v3153_v30 }
 0x138   : > { %v377_v38 = vadd.f32 %v376_v34, %v375_v32  ;;  %v381_v40 = vmul.f32 %v375_v32, %v375_v32  ;;  %v382_v25 = vmul.f32 %v376_v34, %v376_v34 }
 0x13a   : > { %378 = vadd.xlane.f32.xlu2 %v377_v38  ;;  %v383_v46 = vadd.f32 %v382_v25, %v381_v40 }
 0x13c   : > { %384 = vadd.xlane.f32.xlu0 %v383_v46 }
 0x145   : > { %v3169_v61 = vpop.permute.xlu2 %2483 }
 0x146   : > { %v2486_v47 = vunpack.i.h.bf16 %v3169_v61 }
 0x14d   : > { %v3182_v62 = vpop.permute.xlu2 %2488 }
 0x14e   : > { %v2490_v43 = vunpack.i.l.bf16 %v3182_v62 }
 0x150   : > { %v3199_v18 = vsel %vm264_vm3, %v2486_v47, %v2490_v43 }
 0x155   : > { %v3231_v22 = vpop.permute.xlu2 %2493 }
 0x156   : > { %v2496_v4 = vunpack.i.h.bf16 %v3231_v22 }
 0x178   : > { %v3159_v12 = vpop.f32.mrf.mxu2  ;;  %v3161_v31 = vpop.f32.mrf.mxu3 }
 0x179   : > { %v598_v3 = vmul.f32 %v3159_v12, %v3147_v24  ;;  %v599_v36 = vmul.f32 %v3161_v31, %v3149_v1 }
 0x17b   : > { %v604_v7 = vmul.f32 %v598_v3, %v598_v3  ;;  %v605_v44 = vmul.f32 %v599_v36, %v599_v36  ;;  %v600_v50 = vadd.f32 %v599_v36, %v598_v3 }
 0x17d   : > { %v606_v51 = vadd.f32 %v605_v44, %v604_v7  ;;  %601 = vadd.xlane.f32.xlu1 %v600_v50 }
 0x17f   : > { %607 = vadd.xlane.f32.xlu2 %v606_v51 }
 0x18e   : > { %v3171_v56 = vpop.f32.mrf.mxu0  ;;  %v3173_v57 = vpop.f32.mrf.mxu1 }
 0x18f   : > { %v822_v54 = vmul.f32 %v3171_v56, %v3147_v24  ;;  %v823_v9 = vmul.f32 %v3173_v57, %v3149_v1 }
 0x191   : > { %v824_v58 = vadd.f32 %v823_v9, %v822_v54  ;;  %v828_v21 = vmul.f32 %v822_v54, %v822_v54  ;;  %v829_v11 = vmul.f32 %v823_v9, %v823_v9 }
 0x193   : > { %825 = vadd.xlane.f32.xlu1 %v824_v58  ;;  %v830_v60 = vadd.f32 %v829_v11, %v828_v21 }
 0x195   : > { %831 = vadd.xlane.f32.xlu0 %v830_v60 }
 0x197   : > { %1105 = vrot.lane.b32.xlu2 %v3180_v55, %s2707_s23 }
 0x198   : > { %v3186_v63 = vpop.f32.mrf.mxu2  ;;  %v3188_v20 = vpop.f32.mrf.mxu3 }
 0x199   : > { %v1044_v59 = vmul.f32 %v3186_v63, %v3147_v24  ;;  %v1045_v26 = vmul.f32 %v3188_v20, %v3149_v1 }
 0x19b   : > { %v1046_v10 = vadd.f32 %v1045_v26, %v1044_v59  ;;  %v1050_v53 = vmul.f32 %v1044_v59, %v1044_v59  ;;  %v1051_v14 = vmul.f32 %v1045_v26, %v1045_v26 }
 0x19d   : > { %1047 = vadd.xlane.f32.xlu0 %v1046_v10  ;;  %v1052_v33 = vadd.f32 %v1051_v14, %v1050_v53  ;;  %v2495_v14 = vunpack.i.l.bf16 %v3231_v22 }
 0x19f   : > { %1053 = vadd.xlane.f32.xlu1 %v1052_v33  ;;  %2508 = vrot.lane.b32.xlu2 %v3062_v45, %s2719_s17 }
 0x1a7   : > { %1141 = vrot.lane.b32.xlu2 %v3180_v55, %s2719_s17 }
 0x1ad   : > { %v379_v27 = vpop.xlane.xlu2 %378 }
 0x1af   : > { %2518 = vrot.lane.b32.xlu2 %v3205_v37, %s2720_s22  ;;  %v385_v23 = vpop.xlane.xlu0 %384 }
 0x1b1   : > { %2498 = vrot.lane.b32.xlu0 %v3062_v45, %s2709_s25 }
 0x1b7   : > { %2533 = vrot.lane.b32.xlu2 %v3062_v45, %s2721_s24 }
 0x1b8   : > { %2503 = vrot.lane.b32.xlu1 %v3205_v37, %s2709_s25 }
 0x1b9   : > { %2513 = vrot.lane.b32.xlu0 %v3062_v45, %s2720_s22 }
 0x1c0   : > { %2523 = vrot.lane.b32.xlu1 %v3062_v45, %s2722_s28 }
 0x1c1   : > { %2528 = vrot.lane.b32.xlu0 %v3205_v37, %s2722_s28 }
 0x1c8   : > { %2538 = vrot.lane.b32.xlu1 %v3205_v37, %s2721_s24 }
 0x1d0   : > { %2543 = vrot.lane.b32.xlu1 %v3062_v45, %s2723_s29 }
 0x1d8   : > { %2548 = vrot.lane.b32.xlu1 %v3205_v37, %s2723_s29 }
 0x1e0   : > { %2553 = vrot.lane.b32.xlu1 %v3229_v52, %s2721_s24 }
 0x1e8   : > { %2558 = vrot.lane.b32.xlu1 %v3062_v45, %s2724_s5 }
 0x1f0   : > { %1383 = vrot.lane.b32.xlu1 %v3180_v55, %s2724_s5  ;;  %v602_v35 = vpop.xlane.xlu1 %601 }
 0x1f1   : > { %v603_v2 = vadd.f32 %v602_v35, %v379_v27 }
 0x1f2   : > { %v608_v28 = vpop.xlane.xlu2 %607 }
 0x1f3   : > { %v609_v0 = vadd.f32 %v608_v28, %v385_v23 }
 0x1f8   : > { %2573 = vrot.lane.b32.xlu1 %v3205_v37, %s2710_s26 }
 0x1fa   : > { %v1106_v49 = vpop.permute.xlu2 %1105 }
 0x1fb   : > { %v3241_v29 = vsel %vm283_vm2, %v2496_v4, %v1106_v49  ;;  %v2480_v49 = vunpack.i.l.bf16 %v3167_v6 }
 0x200   : > { %2578 = vrot.lane.b32.xlu1 %v3062_v45, %s2725_s6 }
 0x202   : > { %v3245_v13 = vpop.permute.xlu2 %2508 }
 0x203   : > { %v2511_v60 = vunpack.i.h.bf16 %v3245_v13  ;;  %v2510_v43 = vunpack.i.l.bf16 %v3245_v13 }
 0x205   : > { %v1144_v27 = vsel %vm1143_vm12, %v2510_v43, %v2511_v60 }
 0x206   : > { %v826_v39 = vpop.xlane.xlu1 %825 }
 0x207   : > { %v827_v41 = vadd.f32 %v826_v39, %v603_v2  ;;  %v2485_v2 = vunpack.i.l.bf16 %v3169_v61  ;;  %v1107_v39 = vsel %vm283_vm2, %v2495_v14, %v2496_v4 }
 0x208   : > { %2583 = vrot.lane.b32.xlu1 %v3229_v52, %s2709_s25  ;;  %v832_v15 = vpop.xlane.xlu0 %831 }
 0x209   : > { %v833_v17 = vadd.f32 %v832_v15, %v609_v0  ;;  %v1089_v15 = vsel %vm264_vm3, %v2485_v2, %v2486_v47 }
 0x20a   : > { %v3249_v19 = vpop.permute.xlu2 %1141 }
 0x210   : > { %2598 = vrot.lane.b32.xlu1 %v3229_v52, %s2711_s27  ;;  %v1048_v32 = vpop.xlane.xlu0 %1047 }
 0x211   : > { %v3253_v34 = vadd.f32 %v1048_v32, %v827_v41  ;;  %v2281_v41 = vunpack.i.h.bf16 %v2879_v16  ;;  %v2156_v32 = vld [vmem:[%s3544_s2 + $0x20] sm:$0xff] }
 0x212   : > { %v1054_v38 = vpop.xlane.xlu1 %1053  ;;  %v3255_v40 = vpop.permute.xlu2 %2518 }
 0x213   : > { %v3257_v25 = vadd.f32 %v1054_v38, %v833_v17  ;;  %v2520_v13 = vunpack.i.l.bf16 %v3255_v40  ;;  %v1071_v38 = vsel %vm245_vm4, %v2281_v41, %v2480_v49 }
 0x218   : > { %2613 = vrot.lane.b32.xlu1 %v3229_v52, %s2705_s21 }
 0x21a   : > { %v2534_v46 = vpop.permute.xlu2 %2533 }
 0x21b   : > { %v2536_v3 = vunpack.i.h.bf16 %v2534_v46  ;;  %v2535_v36 = vunpack.i.l.bf16 %v2534_v46 }
 0x21d   : > { %v1201_v7 = vsel %vm1200_vm5, %v2535_v36, %v2536_v3 }
 0x21e   : > { %1236 = vmatpush.msra.mxu0 %v1201_v7 }
 0x220   : > { %2623 = vrot.lane.b32.xlu1 %v3062_v45, %s2721_s24 }
 0x223   : > { %v2499_v44 = vpop.permute.xlu0 %2498 }
 0x224   : > { %v2500_v10 = vunpack.i.l.bf16 %v2499_v44  ;;  %v2501_v33 = vunpack.i.h.bf16 %v2499_v44  ;;  %v2481_v44 = vunpack.i.h.bf16 %v3167_v6 }
 0x226   : > { %v1125_v0 = vsel %vm302_vm1, %v2500_v10, %v2501_v33 }
 0x228   : > { %2638 = vrot.lane.b32.xlu1 %v3229_v52, %s2718_s7  ;;  %s2727_s7 = smov 44  }
 0x22a   : > { %v3266_v50 = vpop.permute.xlu1 %2503 }
 0x22b   : > { %v2514_v51 = vpop.permute.xlu0 %2513  ;;  %v2505_v4 = vunpack.i.l.bf16 %v3266_v50 }
 0x22c   : > { %v2515_v54 = vunpack.i.l.bf16 %v2514_v51  ;;  %v2516_v58 = vunpack.i.h.bf16 %v2514_v51 }
 0x22d   : > { %v1126_v36 = vsel %vm302_vm1, %v2501_v33, %v2505_v4 }
 0x22e   : > { %v1163_v26 = vsel %vm1162_vm9, %v2515_v54, %v2516_v58  ;;  %v1164_v46 = vsel %vm1162_vm9, %v2516_v58, %v2520_v13  ;;  %v1072_v54 = vsel %vm245_vm4, %v2480_v49, %v2481_v44  ;;  %vm1385_vm4 = vcmask 441344  }
 0x230   : > { %2653 = vrot.lane.b32.xlu1 %v3205_v37, %s2715_s4 }
 0x232   : > { %v2524_v9 = vpop.permute.xlu1 %2523 }
 0x233   : > { %v2526_v21 = vunpack.i.h.bf16 %v2524_v9  ;;  %v2525_v11 = vunpack.i.l.bf16 %v2524_v9  ;;  %v3274_v53 = vpop.permute.xlu0 %2528 }
 0x234   : > { %v2530_v28 = vunpack.i.l.bf16 %v3274_v53 }
 0x235   : > { %v1182_v59 = vsel %vm1181_vm8, %v2525_v11, %v2526_v21 }
 0x236   : > { %1237 = vmatpush.msra.mxu0 %v1182_v59  ;;  %v1183_v17 = vsel %vm1181_vm8, %v2526_v21, %v2530_v28 }
 0x238   : > { %2668 = vrot.lane.b32.xlu1 %v3229_v52, %s2714_s30  ;;  %1238 = vmatpush.msra.mxu0 %v1163_v26  ;;  %s2726_s30 = smov 43  }
 0x23a   : > { %v2539_v35 = vpop.permute.xlu1 %2538  ;;  %1239 = vmatpush.msra.mxu0 %v1144_v27 }
 0x23b   : > { %v2540_v23 = vunpack.i.l.bf16 %v2539_v35  ;;  %v2541_v9 = vunpack.i.h.bf16 %v2539_v35 }
 0x23c   : > { %1240 = vmatpush.msra.mxu0 %v1125_v0 }
 0x23d   : > { %v1202_v22 = vsel %vm1200_vm5, %v2536_v3, %v2540_v23  ;;  %v1145_v3 = vsel %vm1143_vm12, %v2511_v60, %v3249_v19 }
 0x23e   : > { %1241 = vmatpush.msra.mxu0 %v1107_v39  ;;  %1256 = vmatpush.msra.mxu1 %v1202_v22 }
 0x240   : > { %1242 = vmatpush.msra.mxu0 %v1089_v15  ;;  %1257 = vmatpush.msra.mxu1 %v1183_v17 }
 0x241   : > { %2683 = vrot.lane.b32.xlu1 %v3229_v52, %s2709_s25 }
 0x242   : > { %v2544_v16 = vpop.permute.xlu1 %2543  ;;  %1243 = vmatpush.msra.mxu0 %v1071_v38  ;;  %1258 = vmatpush.msra.mxu1 %v1164_v46 }
 0x243   : > { %v2546_v61 = vunpack.i.h.bf16 %v2544_v16  ;;  %v2545_v47 = vunpack.i.l.bf16 %v2544_v16  ;;  %2157 = vmatmul.msk.f32.vlgmr.msra.gmra.mxu0 %vm326_vm10, %v2156_v32 }
 0x244   : > { %1259 = vmatpush.msra.mxu1 %v1145_v3 }
 0x245   : > { %v1423_v7 = vsel %vm1422_vm6, %v2545_v47, %v2546_v61 }
 0x246   : > { %1260 = vmatpush.msra.mxu1 %v1126_v36  ;;  %1458 = vmatpush.msra.mxu2 %v1423_v7 }
 0x248   : > { %1261 = vmatpush.msra.mxu1 %v3241_v29 }
 0x24a   : > { %v3307_v51 = vpop.permute.xlu1 %2548  ;;  %1262 = vmatpush.msra.mxu1 %v3199_v18 }
 0x24b   : > { %v2550_v10 = vunpack.i.l.bf16 %v3307_v51 }
 0x24c   : > { %1263 = vmatpush.msra.mxu1 %v1072_v54 }
 0x24d   : > { %2158 = vmatmul.msk.f32.vlgmr.msra.gmra.mxu1 %vm326_vm10, %v2156_v32  ;;  %v1424_v33 = vsel %vm1422_vm6, %v2546_v61, %v2550_v10 }
 0x24e   : > { %1478 = vmatpush.msra.mxu3 %v1424_v33 }
 0x252   : > { %v2554_v19 = vpop.permute.xlu1 %2553 }
 0x253   : > { %v2555_v58 = vunpack.i.l.bf16 %v2554_v19  ;;  %v2556_v14 = vunpack.i.h.bf16 %v2554_v19 }
 0x255   : > { %v1404_v21 = vsel %vm1200_vm5, %v2541_v9, %v2555_v58  ;;  %v1405_v27 = vsel %vm1200_vm5, %v2555_v58, %v2556_v14 }
 0x256   : > { %1459 = vmatpush.msra.mxu2 %v1404_v21  ;;  %1479 = vmatpush.msra.mxu3 %v1405_v27 }
 0x25a   : > { %v2559_v35 = vpop.permute.xlu1 %2558 }
 0x25b   : > { %v2561_v2 = vunpack.i.h.bf16 %v2559_v35  ;;  %v2560_v28 = vunpack.i.l.bf16 %v2559_v35 }
 0x25d   : > { %v1386_v0 = vsel %vm1385_vm4, %v2560_v28, %v2561_v2 }
 0x25e   : > { %1460 = vmatpush.msra.mxu2 %v1386_v0 }
 0x262   : > { %v1384_v23 = vpop.permute.xlu1 %1383 }
 0x263   : > { %v1387_v49 = vsel %vm1385_vm4, %v2561_v2, %v1384_v23 }
 0x264   : > { %1480 = vmatpush.msra.mxu3 %v1387_v49 }
 0x26a   : > { %v3355_v13 = vpop.permute.xlu1 %2573 }
 0x26b   : > { %v2575_v47 = vunpack.i.l.bf16 %v3355_v13 }
 0x2c0   : > { %v3313_v11 = vpop.f32.mrf.mxu0 }
 0x2c1   : > { %v1268_v6 = vmul.f32 %v3313_v11, %v3147_v24 }
 0x2c3   : > { %v1274_v60 = vmul.f32 %v1268_v6, %v1268_v6 }
 0x2ca   : > { %v3317_v29 = vpop.f32.mrf.mxu1 }
 0x2cb   : > { %v1269_v18 = vmul.f32 %v3317_v29, %v3149_v1 }
 0x2cd   : > { %v1270_v43 = vadd.f32 %v1269_v18, %v1268_v6  ;;  %v1275_v59 = vmul.f32 %v1269_v18, %v1269_v18  ;;  %v2351_v6 = vunpack.i.h.bf16 %v3002_v48 }
 0x2cf   : > { %1271 = vadd.xlane.f32.xlu0 %v1270_v43  ;;  %v1276_v26 = vadd.f32 %v1275_v59, %v1274_v60  ;;  %v2491_v59 = vunpack.i.h.bf16 %v3182_v62  ;;  %v2161_v62 = vld [vmem:[%s3544_s2 + $0x28] sm:$0xff] }
 0x2d1   : > { %1277 = vadd.xlane.f32.xlu2 %v1276_v26 }
 0x2e3   : > { %2568 = vrot.lane.b32.xlu0 %v3062_v45, %s2710_s26 }
 0x2e9   : > { %2563 = vrot.lane.b32.xlu2 %v3229_v52, %s2720_s22 }
 0x2eb   : > { %1863 = vrot.lane.b32.xlu0 %v3180_v55, %s2725_s6 }
 0x2f1   : > { %2588 = vrot.lane.b32.xlu2 %v3062_v45, %s2726_s30 }
 0x2f3   : > { %2593 = vrot.lane.b32.xlu0 %v3205_v37, %s2726_s30 }
 0x2f9   : > { %2603 = vrot.lane.b32.xlu2 %v3229_v52, %s2726_s30 }
 0x2fb   : > { %2608 = vrot.lane.b32.xlu0 %v3229_v52, %s2723_s29 }
 0x301   : > { %2618 = vrot.lane.b32.xlu2 %v3062_v45, %s2727_s7 }
 0x303   : > { %1623 = vrot.lane.b32.xlu0 %v3180_v55, %s2727_s7 }
 0x309   : > { %2628 = vrot.lane.b32.xlu2 %v3205_v37, %s2721_s24 }
 0x30b   : > { %2633 = vrot.lane.b32.xlu0 %v3229_v52, %s2721_s24 }
 0x311   : > { %2643 = vrot.lane.b32.xlu2 %v3229_v52, %s2722_s28 }
 0x313   : > { %2648 = vrot.lane.b32.xlu0 %v3062_v45, %s2715_s4 }
 0x319   : > { %2658 = vrot.lane.b32.xlu2 %v3229_v52, %s2715_s4 }
 0x31b   : > { %2663 = vrot.lane.b32.xlu0 %v3229_v52, %s2710_s26  ;;  %v3359_v52 = vpop.permute.xlu1 %2578 }
 0x31c   : > { %v2580_v26 = vunpack.i.l.bf16 %v3359_v52 }
 0x321   : > { %2673 = vrot.lane.b32.xlu2 %v3062_v45, %s2709_s25 }
 0x323   : > { %2678 = vrot.lane.b32.xlu0 %v3205_v37, %s2709_s25  ;;  %v2584_v39 = vpop.permute.xlu1 %2583 }
 0x324   : > { %v2586_v61 = vunpack.i.h.bf16 %v2584_v39 }
 0x329   : > { %2688 = vrot.lane.b32.xlu2 %v3062_v45, %s2707_s23  ;;  %v2521_v45 = vunpack.i.h.bf16 %v3255_v40  ;;  %v2506_v40 = vunpack.i.h.bf16 %v3266_v50  ;;  %v2581_v50 = vunpack.i.h.bf16 %v3359_v52 }
 0x32b   : > { %1515 = vrot.lane.b32.xlu0 %v3180_v55, %s2707_s23  ;;  %v2599_v17 = vpop.permute.xlu1 %2598 }
 0x32c   : > { %v2601_v36 = vunpack.i.h.bf16 %v2599_v17  ;;  %v2600_v54 = vunpack.i.l.bf16 %v2599_v17 }
 0x32e   : > { %v1314_v43 = vsel %vm493_vm11, %v2600_v54, %v2601_v36  ;;  %v1313_v35 = vsel %vm493_vm11, %v2351_v6, %v2600_v54 }
 0x333   : > { %v2614_v16 = vpop.permute.xlu1 %2613 }
 0x334   : > { %v2616_v19 = vunpack.i.h.bf16 %v2614_v16  ;;  %v2615_v18 = vunpack.i.l.bf16 %v2614_v16 }
 0x336   : > { %v1296_v48 = vsel %vm264_vm3, %v2615_v18, %v2616_v19  ;;  %v1295_v49 = vsel %vm264_vm3, %v2491_v59, %v2615_v18  ;;  %vm1625_vm3 = vcmask 359424  }
 0x33b   : > { %v2624_v10 = vpop.permute.xlu1 %2623 }
 0x342   : > { %v1272_v22 = vpop.xlane.xlu0 %1271 }
 0x343   : > { %v3362_v41 = vadd.f32 %v1272_v22, %v3253_v34 }
 0x344   : > { %v1278_v37 = vpop.xlane.xlu2 %1277 }
 0x345   : > { %v3365_v15 = vadd.f32 %v1278_v37, %v3257_v25  ;;  %v2585_v25 = vunpack.i.l.bf16 %v2584_v39  ;;  %v1866_v39 = vsel %vm1865_vm7, %v2580_v26, %v2581_v50 }
 0x347   : > { %v1332_v21 = vsel %vm302_vm1, %v2585_v25, %v2586_v61  ;;  %v1331_v60 = vsel %vm302_vm1, %v2506_v40, %v2585_v25 }
 0x34c   : > { %v2564_v32 = vpop.permute.xlu2 %2563 }
 0x34d   : > { %v2566_v4 = vunpack.i.h.bf16 %v2564_v32  ;;  %v2565_v38 = vunpack.i.l.bf16 %v2564_v32 }
 0x34f   : > { %v1367_v46 = vsel %vm1162_vm9, %v2521_v45, %v2565_v38  ;;  %v1368_v55 = vsel %vm1162_vm9, %v2565_v38, %v2566_v4  ;;  %vm1644_vm9 = vcmask 351232   ;;  %v2639_v4 = vpop.permute.xlu1 %2638 }
 0x350   : > { %1461 = vmatpush.msra.mxu2 %v1367_v46  ;;  %1481 = vmatpush.msra.mxu3 %v1368_v55  ;;  %v2640_v19 = vunpack.i.l.bf16 %v2639_v4 }
 0x354   : > { %v2589_v34 = vpop.permute.xlu2 %2588 }
 0x355   : > { %v2569_v3 = vpop.permute.xlu0 %2568  ;;  %v2591_v14 = vunpack.i.h.bf16 %v2589_v34  ;;  %v2590_v33 = vunpack.i.l.bf16 %v2589_v34  ;;  %v2626_v34 = vunpack.i.h.bf16 %v2624_v10 }
 0x356   : > { %v2571_v7 = vunpack.i.h.bf16 %v2569_v3  ;;  %v2570_v44 = vunpack.i.l.bf16 %v2569_v3 }
 0x357   : > { %v1847_v22 = vsel %vm1644_vm9, %v2590_v33, %v2591_v14 }
 0x358   : > { %v1349_v9 = vsel %vm530_vm0, %v2570_v44, %v2571_v7  ;;  %v1350_v58 = vsel %vm530_vm0, %v2571_v7, %v2575_v47  ;;  %v2625_v47 = vunpack.i.l.bf16 %v2624_v10  ;;  %v2551_v7 = vunpack.i.h.bf16 %v3307_v51 }
 0x359   : > { %1462 = vmatpush.msra.mxu2 %v1349_v9  ;;  %1482 = vmatpush.msra.mxu3 %v1350_v58  ;;  %v2641_v44 = vunpack.i.h.bf16 %v2639_v4  ;;  %v2654_v9 = vpop.permute.xlu1 %2653 }
 0x35a   : > { %v1811_v6 = vsel %vm1200_vm5, %v2625_v47, %v2626_v34 }
 0x35b   : > { %1463 = vmatpush.msra.mxu2 %v1331_v60  ;;  %1483 = vmatpush.msra.mxu3 %v1332_v21  ;;  %v2476_v60 = vunpack.i.h.bf16 %v3030_v42 }
 0x35c   : > { %v2604_v27 = vpop.permute.xlu2 %2603 }
 0x35d   : > { %v2606_v2 = vunpack.i.h.bf16 %v2604_v27  ;;  %v2605_v28 = vunpack.i.l.bf16 %v2604_v27  ;;  %v1864_v23 = vpop.permute.xlu0 %1863  ;;  %1464 = vmatpush.msra.mxu2 %v1313_v35  ;;  %1484 = vmatpush.msra.mxu3 %v1314_v43  ;;  %v1794_v43 = vsel %vm976_vm13, %v2640_v19, %v2641_v44  ;;  %v1793_v59 = vsel %vm976_vm13, %v2476_v60, %v2640_v19 }
 0x35e   : > { %v1867_v0 = vsel %vm1865_vm7, %v2581_v50, %v1864_v23  ;;  %v2656_v27 = vunpack.i.h.bf16 %v2654_v9  ;;  %v2576_v19 = vunpack.i.h.bf16 %v3355_v13 }
 0x35f   : > { %1465 = vmatpush.msra.mxu2 %v1295_v49  ;;  %1485 = vmatpush.msra.mxu3 %v1296_v48  ;;  %v1646_v52 = vsel %vm1644_vm9, %v2605_v28, %v2606_v2 }
 0x360   : > { %2162 = vmatmul.msk.f32.vlgmr.msra.gmra.mxu2 %vm326_vm10, %v2161_v62  ;;  %2163 = vmatmul.msk.f32.vlgmr.msra.gmra.mxu3 %vm326_vm10, %v2161_v62 }
 0x361   : > { %1901 = vmatpush.msrb.mxu2 %v1866_v39  ;;  %1921 = vmatpush.msrb.mxu3 %v1867_v0  ;;  %v2669_v10 = vpop.permute.xlu1 %2668  ;;  %v2531_v0 = vunpack.i.h.bf16 %v3274_v53 }
 0x362   : > { %1700 = vmatpush.msrb.mxu1 %v1646_v52  ;;  %v2671_v49 = vunpack.i.h.bf16 %v2669_v10 }
 0x363   : > { %1902 = vmatpush.msrb.mxu2 %v1847_v22 }
 0x364   : > { %v2619_v37 = vpop.permute.xlu2 %2618 }
 0x365   : > { %v2621_v17 = vunpack.i.h.bf16 %v2619_v37  ;;  %v2620_v32 = vunpack.i.l.bf16 %v2619_v37  ;;  %v2594_v45 = vpop.permute.xlu0 %2593  ;;  %v2670_v37 = vunpack.i.l.bf16 %v2669_v10 }
 0x366   : > { %v2596_v38 = vunpack.i.h.bf16 %v2594_v45  ;;  %v2595_v46 = vunpack.i.l.bf16 %v2594_v45 }
 0x367   : > { %v1626_v61 = vsel %vm1625_vm3, %v2620_v32, %v2621_v17 }
 0x368   : > { %v1645_v55 = vsel %vm1644_vm9, %v2596_v38, %v2605_v28  ;;  %v1848_v16 = vsel %vm1644_vm9, %v2591_v14, %v2595_v46  ;;  %v2421_v38 = vunpack.i.h.bf16 %v3068_v8  ;;  %v2655_v46 = vunpack.i.l.bf16 %v2654_v9 }
 0x369   : > { %1680 = vmatpush.msrb.mxu0 %v1645_v55  ;;  %1922 = vmatpush.msrb.mxu3 %v1848_v16  ;;  %v2684_v4 = vpop.permute.xlu1 %2683  ;;  %v1554_v55 = vsel %vm735_vm15, %v2670_v37, %v2671_v49 }
 0x36a   : > { %v2686_v53 = vunpack.i.h.bf16 %v2684_v4 }
 0x36b   : > { %1681 = vmatpush.msrb.mxu0 %v1626_v61  ;;  %v2685_v61 = vunpack.i.l.bf16 %v2684_v4 }
 0x36c   : > { %v2629_v3 = vpop.permute.xlu2 %2628 }
 0x36d   : > { %v2630_v25 = vunpack.i.l.bf16 %v2629_v3  ;;  %v2609_v36 = vpop.permute.xlu0 %2608  ;;  %v2631_v35 = vunpack.i.h.bf16 %v2629_v3  ;;  %v1553_v3 = vsel %vm735_vm15, %v2421_v38, %v2670_v37 }
 0x36e   : > { %v2611_v40 = vunpack.i.h.bf16 %v2609_v36  ;;  %v2610_v54 = vunpack.i.l.bf16 %v2609_v36  ;;  %v1536_v36 = vsel %vm302_vm1, %v2685_v61, %v2686_v53 }
 0x36f   : > { %v1812_v18 = vsel %vm1200_vm5, %v2626_v34, %v2630_v25 }
 0x370   : > { %v1829_v58 = vsel %vm1422_vm6, %v2551_v7, %v2610_v54  ;;  %v1830_v21 = vsel %vm1422_vm6, %v2610_v54, %v2611_v40 }
 0x371   : > { %1903 = vmatpush.msrb.mxu2 %v1829_v58  ;;  %1923 = vmatpush.msrb.mxu3 %v1830_v21 }
 0x373   : > { %1904 = vmatpush.msrb.mxu2 %v1811_v6  ;;  %1924 = vmatpush.msrb.mxu3 %v1812_v18 }
 0x374   : > { %v2644_v51 = vpop.permute.xlu2 %2643 }
 0x375   : > { %v1624_v50 = vpop.permute.xlu0 %1623  ;;  %1905 = vmatpush.msrb.mxu2 %v1793_v59  ;;  %1925 = vmatpush.msrb.mxu3 %v1794_v43  ;;  %v2646_v14 = vunpack.i.h.bf16 %v2644_v51  ;;  %v2645_v48 = vunpack.i.l.bf16 %v2644_v51  ;;  %v2171_v43 = vld [vmem:[%s3544_s2 + $0x38] sm:$0xff] }
 0x376   : > { %v1627_v26 = vsel %vm1625_vm3, %v2621_v17, %v1624_v50 }
 0x377   : > { %1701 = vmatpush.msrb.mxu1 %v1627_v26  ;;  %v1590_v22 = vsel %vm1181_vm8, %v2645_v48, %v2646_v14  ;;  %v1589_v17 = vsel %vm1181_vm8, %v2531_v0, %v2645_v48 }
 0x37c   : > { %v2659_v33 = vpop.permute.xlu2 %2658 }
 0x37d   : > { %v2634_v42 = vpop.permute.xlu0 %2633  ;;  %v2661_v23 = vunpack.i.h.bf16 %v2659_v33  ;;  %v2660_v62 = vunpack.i.l.bf16 %v2659_v33 }
 0x37e   : > { %v2636_v2 = vunpack.i.h.bf16 %v2634_v42  ;;  %v2635_v28 = vunpack.i.l.bf16 %v2634_v42 }
 0x37f   : > { %v1571_v32 = vsel %vm754_vm14, %v2656_v27, %v2660_v62  ;;  %v1572_v45 = vsel %vm754_vm14, %v2660_v62, %v2661_v23  ;;  %v2166_v27 = vld [vmem:[%s3544_s2 + $0x30] sm:$0xff] }
 0x380   : > { %v1607_v52 = vsel %vm1200_vm5, %v2631_v35, %v2635_v28  ;;  %v1608_v39 = vsel %vm1200_vm5, %v2635_v28, %v2636_v2 }
 0x381   : > { %1682 = vmatpush.msrb.mxu0 %v1607_v52  ;;  %1702 = vmatpush.msrb.mxu1 %v1608_v39 }
 0x383   : > { %1683 = vmatpush.msrb.mxu0 %v1589_v17  ;;  %1703 = vmatpush.msrb.mxu1 %v1590_v22 }
 0x384   : > { %v2674_v25 = vpop.permute.xlu2 %2673 }
 0x385   : > { %v2649_v16 = vpop.permute.xlu0 %2648  ;;  %1684 = vmatpush.msrb.mxu0 %v1571_v32  ;;  %1704 = vmatpush.msrb.mxu1 %v1572_v45  ;;  %v2676_v44 = vunpack.i.h.bf16 %v2674_v25  ;;  %v2675_v40 = vunpack.i.l.bf16 %v2674_v25 }
 0x386   : > { %v2651_v34 = vunpack.i.h.bf16 %v2649_v16  ;;  %v2650_v47 = vunpack.i.l.bf16 %v2649_v16 }
 0x387   : > { %1685 = vmatpush.msrb.mxu0 %v1553_v3  ;;  %1705 = vmatpush.msrb.mxu1 %v1554_v55  ;;  %v1739_v18 = vsel %vm302_vm1, %v2675_v40, %v2676_v44 }
 0x388   : > { %v1775_v7 = vsel %vm754_vm14, %v2650_v47, %v2651_v34  ;;  %v1776_v8 = vsel %vm754_vm14, %v2651_v34, %v2655_v46 }
 0x389   : > { %1906 = vmatpush.msrb.mxu2 %v1775_v7  ;;  %1926 = vmatpush.msrb.mxu3 %v1776_v8 }
 0x38a   : > { %1706 = vmatpush.msrb.mxu1 %v1536_v36 }
 0x38c   : > { %v2689_v60 = vpop.permute.xlu2 %2688 }
 0x38d   : > { %v2664_v54 = vpop.permute.xlu0 %2663  ;;  %v2691_v51 = vunpack.i.h.bf16 %v2689_v60  ;;  %v2690_v59 = vunpack.i.l.bf16 %v2689_v60 }
 0x38e   : > { %v2666_v9 = vunpack.i.h.bf16 %v2664_v54  ;;  %v2665_v58 = vunpack.i.l.bf16 %v2664_v54 }
 0x38f   : > { %v1517_v33 = vsel %vm283_vm2, %v2690_v59, %v2691_v51 }
 0x390   : > { %v1757_v21 = vsel %vm530_vm0, %v2576_v19, %v2665_v58  ;;  %v1758_v6 = vsel %vm530_vm0, %v2665_v58, %v2666_v9 }
 0x391   : > { %1907 = vmatpush.msrb.mxu2 %v1757_v21  ;;  %1927 = vmatpush.msrb.mxu3 %v1758_v6 }
 0x393   : > { %1908 = vmatpush.msrb.mxu2 %v1739_v18 }
 0x394   : > { %2172 = vmatmul.msk.f32.vlgmr.msrb.gmra.mxu2 %vm326_vm10, %v2171_v43 }
 0x395   : > { %v2679_v13 = vpop.permute.xlu0 %2678 }
 0x396   : > { %v2681_v50 = vunpack.i.h.bf16 %v2679_v13  ;;  %v2680_v26 = vunpack.i.l.bf16 %v2679_v13 }
 0x398   : > { %v1535_v10 = vsel %vm302_vm1, %v2681_v50, %v2685_v61  ;;  %v1740_v14 = vsel %vm302_vm1, %v2676_v44, %v2680_v26 }
 0x399   : > { %1686 = vmatpush.msrb.mxu0 %v1535_v10  ;;  %1928 = vmatpush.msrb.mxu3 %v1740_v14 }
 0x39a   : > { %2173 = vmatmul.msk.f32.vlgmr.msrb.gmra.mxu3 %vm326_vm10, %v2171_v43 }
 0x39b   : > { %1687 = vmatpush.msrb.mxu0 %v1517_v33 }
 0x39c   : > { %2167 = vmatmul.msk.f32.vlgmr.msrb.gmra.mxu0 %vm326_vm10, %v2166_v27 }
 0x39d   : > { %v1516_v35 = vpop.permute.xlu0 %1515 }
 0x39e   : > { %v1518_v48 = vsel %vm283_vm2, %v2691_v51, %v1516_v35 }
 0x39f   : > { %1707 = vmatpush.msrb.mxu1 %v1518_v48 }
 0x3a0   : > { %2168 = vmatmul.msk.f32.vlgmr.msrb.gmra.mxu1 %vm326_vm10, %v2166_v27 }
 0x3e3   : > { %v3434_v42 = vpop.f32.mrf.mxu2  ;;  %v3436_v2 = vpop.f32.mrf.mxu3 }
 0x3e4   : > { %v1490_v28 = vmul.f32 %v3434_v42, %v3147_v24  ;;  %v1491_v23 = vmul.f32 %v3436_v2, %v3149_v1 }
 0x3e6   : > { %v1492_v62 = vadd.f32 %v1491_v23, %v1490_v28  ;;  %v1496_v0 = vmul.f32 %v1490_v28, %v1490_v28  ;;  %v1497_v49 = vmul.f32 %v1491_v23, %v1491_v23 }
 0x3e8   : > { %1493 = vadd.xlane.f32.xlu1 %v1492_v62  ;;  %v1498_v52 = vadd.f32 %v1497_v49, %v1496_v0 }
 0x3ea   : > { %1499 = vadd.xlane.f32.xlu2 %v1498_v52 }
 0x417   : > { %v3444_v22 = vpop.f32.mrf.mxu2 }
 0x418   : > { %v1933_v17 = vmul.f32 %v3444_v22, %v3147_v24 }
 0x419   : > { %v3442_v39 = vpop.f32.mrf.mxu0 }
 0x41a   : > { %v1712_v37 = vmul.f32 %v3442_v39, %v3147_v24  ;;  %v1939_v61 = vmul.f32 %v1933_v17, %v1933_v17 }
 0x41c   : > { %v1718_v4 = vmul.f32 %v1712_v37, %v1712_v37 }
 0x41d   : > { %v3450_v32 = vpop.f32.mrf.mxu1  ;;  %v3452_v45 = vpop.f32.mrf.mxu3 }
 0x41e   : > { %v1713_v53 = vmul.f32 %v3450_v32, %v3149_v1  ;;  %v1934_v38 = vmul.f32 %v3452_v45, %v3149_v1 }
 0x420   : > { %v1719_v46 = vmul.f32 %v1713_v53, %v1713_v53  ;;  %v1714_v55 = vadd.f32 %v1713_v53, %v1712_v37  ;;  %v1935_v16 = vadd.f32 %v1934_v38, %v1933_v17  ;;  %v1940_v34 = vmul.f32 %v1934_v38, %v1934_v38 }
 0x422   : > { %1715 = vadd.xlane.f32.xlu0 %v1714_v55  ;;  %1936 = vadd.xlane.f32.xlu2 %v1935_v16  ;;  %v1720_v47 = vadd.f32 %v1719_v46, %v1718_v4  ;;  %v1941_v24 = vadd.f32 %v1940_v34, %v1939_v61 }
 0x424   : > { %1721 = vadd.xlane.f32.xlu1 %v1720_v47 }
 0x42a   : > { %1942 = vadd.xlane.f32.xlu0 %v1941_v24 }
 0x45b   : > { %v1494_v25 = vpop.xlane.xlu1 %1493 }
 0x45c   : > { %v1495_v36 = vadd.f32 %v1494_v25, %v3362_v41 }
 0x45d   : > { %v1500_v3 = vpop.xlane.xlu2 %1499 }
 0x45e   : > { %v1501_v54 = vadd.f32 %v1500_v3, %v3365_v15 }
 0x495   : > { %v1716_v7 = vpop.xlane.xlu0 %1715  ;;  %v1937_v8 = vpop.xlane.xlu2 %1936 }
 0x496   : > { %v1717_v44 = vadd.f32 %v1716_v7, %v1495_v36 }
 0x497   : > { %v1722_v1 = vpop.xlane.xlu1 %1721 }
 0x498   : > { %v1938_v40 = vadd.f32 %v1937_v8, %v1717_v44  ;;  %v1723_v9 = vadd.f32 %v1722_v1, %v1501_v54 }
 0x49a   : > { %v3460_v19 = vmul.f32 0.001953125, %v1938_v40 }
 0x49c   : > { %v1950_v18 = vmul.f32 %v3460_v19, %v3460_v19  ;;  %v1966_v15 = vsub.f32 %v3151_v5, %v3460_v19  ;;  %v1967_v10 = vsub.f32 %v3153_v30, %v3460_v19  ;;  %v1980_v14 = vsub.f32 %v3159_v12, %v3460_v19 }
 0x49d   : > { %v1943_v58 = vpop.xlane.xlu0 %1942  ;;  %v1981_v33 = vsub.f32 %v3161_v31, %v3460_v19  ;;  %v1994_v27 = vsub.f32 %v3171_v56, %v3460_v19  ;;  %v1995_v35 = vsub.f32 %v3173_v57, %v3460_v19  ;;  %v2008_v5 = vsub.f32 %v3186_v63, %v3460_v19 }
 0x49e   : > { %v1944_v21 = vadd.f32 %v1943_v58, %v1723_v9  ;;  %v2009_v30 = vsub.f32 %v3188_v20, %v3460_v19  ;;  %v2022_v12 = vsub.f32 %v3313_v11, %v3460_v19  ;;  %v2023_v31 = vsub.f32 %v3317_v29, %v3460_v19 }
 0x49f   : > { %v2036_v56 = vsub.f32 %v3434_v42, %v3460_v19  ;;  %v2037_v57 = vsub.f32 %v3436_v2, %v3460_v19  ;;  %v2050_v63 = vsub.f32 %v3442_v39, %v3460_v19  ;;  %v2051_v20 = vsub.f32 %v3450_v32, %v3460_v19 }
 0x4a0   : > { %v1949_v6 = vmul.f32 0.001953125, %v1944_v21  ;;  %v2064_v11 = vsub.f32 %v3444_v22, %v3460_v19  ;;  %v2065_v29 = vsub.f32 %v3452_v45, %v3460_v19 }
 0x4a2   : > { %v1951_v60 = vsub.f32 %v1949_v6, %v1950_v18 }
 0x4a4   : > { %v1952_v43 = vmax.f32 %v1951_v60, 0.0 }
 0x4a6   : > { %v1953_v51 = vadd.f32 1e-05, %v1952_v43 }
 0x4a8   : > { %2692 = vrsqrt.f32 %v1953_v51  ;;  %vm1960_vm1 = vweird.f32 %v1953_v51 }
 0x4ae   : > { %v2693_v41 = vpop.eup %2692 }
 0x4af   : > { %v1955_v59 = vmul.f32 %v2693_v41, %v1953_v51  ;;  %vm1961_vm0 = vweird.f32 %v2693_v41 }
 0x4b0   : > { %vm1962_vm2 = vmor %vm1960_vm1, %vm1961_vm0 }
 0x4b1   : > { %v1956_v13 = vmul.f32 %v2693_v41, %v1955_v59 }
 0x4b3   : > { %v1957_v50 = vmul.f32 0.5, %v1956_v13 }
 0x4b5   : > { %v1958_v26 = vsub.f32 1.5, %v1957_v50 }
 0x4b7   : > { %v1959_v48 = vmul.f32 %v2693_v41, %v1958_v26 }
 0x4b9   : > { %v3491_v28 = vsel %vm1962_vm2, %v2693_v41, %v1959_v48 }
 0x4ba   : > { %v1968_v42 = vmul.f32 %v1966_v15, %v3491_v28  ;;  %v1969_v23 = vmul.f32 %v1967_v10, %v3491_v28  ;;  %v1982_v2 = vmul.f32 %v1980_v14, %v3491_v28  ;;  %v1983_v62 = vmul.f32 %v1981_v33, %v3491_v28 }
 0x4bb   : > { %v1996_v0 = vmul.f32 %v1994_v27, %v3491_v28  ;;  %v1997_v49 = vmul.f32 %v1995_v35, %v3491_v28  ;;  %v2010_v52 = vmul.f32 %v2008_v5, %v3491_v28  ;;  %v2011_v39 = vmul.f32 %v2009_v30, %v3491_v28 }
 0x4bc   : > { %vm1970_vm10 = vcmp.ge.f32.partialorder %v1968_v42, 0.0  ;;  %vm1971_vm11 = vcmp.ge.f32.partialorder %v1969_v23, 0.0  ;;  %v1972_v22 = vmul.f32 0.01, %v1968_v42  ;;  %v1973_v37 = vmul.f32 0.01, %v1969_v23 }
 0x4bd   : > { %vm1984_vm13 = vcmp.ge.f32.partialorder %v1982_v2, 0.0  ;;  %vm1985_vm14 = vcmp.ge.f32.partialorder %v1983_v62, 0.0  ;;  %v1986_v17 = vmul.f32 0.01, %v1982_v2  ;;  %v1987_v32 = vmul.f32 0.01, %v1983_v62 }
 0x4be   : > { %v1974_v4 = vsel %vm1970_vm10, %v1968_v42, %v1972_v22  ;;  %v1975_v53 = vsel %vm1971_vm11, %v1969_v23, %v1973_v37  ;;  %vm1998_vm15 = vcmp.ge.f32.partialorder %v1996_v0, 0.0  ;;  %vm1999_vm5 = vcmp.ge.f32.partialorder %v1997_v49, 0.0 }
 0x4bf   : > { %1976 = vst [vmem:[%s3510_s14] sm:$0xff] %v1974_v4  ;;  %v1988_v38 = vsel %vm1984_vm13, %v1982_v2, %v1986_v17  ;;  %v1989_v46 = vsel %vm1985_vm14, %v1983_v62, %v1987_v32  ;;  %v2000_v55 = vmul.f32 0.01, %v1996_v0  ;;  %v2001_v16 = vmul.f32 0.01, %v1997_v49 }
 0x4c0   : > { %1977 = vst [vmem:[%s3510_s14 + $0x8] sm:$0xff] %v1975_v53  ;;  %vm2012_vm8 = vcmp.ge.f32.partialorder %v2010_v52, 0.0  ;;  %vm2013_vm12 = vcmp.ge.f32.partialorder %v2011_v39, 0.0  ;;  %v2014_v61 = vmul.f32 0.01, %v2010_v52  ;;  %v2024_v34 = vmul.f32 %v2022_v12, %v3491_v28 }
 0x4c1   : > { %2178 = vst [vmem:[%s3510_s14 + $0x10] sm:$0xff] %v1988_v38  ;;  %v2002_v47 = vsel %vm1998_vm15, %v1996_v0, %v2000_v55  ;;  %v2003_v24 = vsel %vm1999_vm5, %v1997_v49, %v2001_v16  ;;  %v2015_v3 = vmul.f32 0.01, %v2011_v39  ;;  %v2025_v25 = vmul.f32 %v2023_v31, %v3491_v28 }
 0x4c2   : > { %2179 = vst [vmem:[%s3510_s14 + $0x18] sm:$0xff] %v1989_v46  ;;  %v2016_v36 = vsel %vm2012_vm8, %v2010_v52, %v2014_v61  ;;  %vm2026_vm6 = vcmp.ge.f32.partialorder %v2024_v34, 0.0  ;;  %v2028_v7 = vmul.f32 0.01, %v2024_v34  ;;  %v2038_v8 = vmul.f32 %v2036_v56, %v3491_v28 }
 0x4c3   : > { %2182 = vst [vmem:[%s3510_s14 + $0x20] sm:$0xff] %v2002_v47  ;;  %v2017_v44 = vsel %vm2013_vm12, %v2011_v39, %v2015_v3  ;;  %vm2027_vm4 = vcmp.ge.f32.partialorder %v2025_v25, 0.0  ;;  %v2029_v40 = vmul.f32 0.01, %v2025_v25  ;;  %v2039_v1 = vmul.f32 %v2037_v57, %v3491_v28 }
 0x4c4   : > { %2183 = vst [vmem:[%s3510_s14 + $0x28] sm:$0xff] %v2003_v24  ;;  %v2030_v54 = vsel %vm2026_vm6, %v2024_v34, %v2028_v7  ;;  %vm2040_vm7 = vcmp.ge.f32.partialorder %v2038_v8, 0.0  ;;  %v2042_v9 = vmul.f32 0.01, %v2038_v8  ;;  %v2052_v58 = vmul.f32 %v2050_v63, %v3491_v28 }
 0x4c5   : > { %2186 = vst [vmem:[%s3510_s14 + $0x30] sm:$0xff] %v2016_v36  ;;  %v2031_v21 = vsel %vm2027_vm4, %v2025_v25, %v2029_v40  ;;  %vm2041_vm9 = vcmp.ge.f32.partialorder %v2039_v1, 0.0  ;;  %v2043_v6 = vmul.f32 0.01, %v2039_v1  ;;  %v2053_v18 = vmul.f32 %v2051_v20, %v3491_v28 }
 0x4c6   : > { %2187 = vst [vmem:[%s3510_s14 + $0x38] sm:$0xff] %v2017_v44  ;;  %v2044_v60 = vsel %vm2040_vm7, %v2038_v8, %v2042_v9  ;;  %vm2054_vm3 = vcmp.ge.f32.partialorder %v2052_v58, 0.0  ;;  %v2056_v43 = vmul.f32 0.01, %v2052_v58  ;;  %v2066_v51 = vmul.f32 %v2064_v11, %v3491_v28 }
 0x4c7   : > { %2190 = vst [vmem:[%s3510_s14 + $0x40] sm:$0xff] %v2030_v54  ;;  %v2045_v41 = vsel %vm2041_vm9, %v2039_v1, %v2043_v6  ;;  %vm2055_vm0 = vcmp.ge.f32.partialorder %v2053_v18, 0.0  ;;  %v2057_v59 = vmul.f32 0.01, %v2053_v18  ;;  %v2067_v13 = vmul.f32 %v2065_v29, %v3491_v28 }
 0x4c8   : > { %2191 = vst [vmem:[%s3510_s14 + $0x48] sm:$0xff] %v2031_v21  ;;  %v2058_v50 = vsel %vm2054_vm3, %v2052_v58, %v2056_v43  ;;  %vm2068_vm1 = vcmp.ge.f32.partialorder %v2066_v51, 0.0  ;;  %v2070_v15 = vmul.f32 0.01, %v2066_v51 }
 0x4c9   : > { %2194 = vst [vmem:[%s3510_s14 + $0x50] sm:$0xff] %v2044_v60  ;;  %v2059_v26 = vsel %vm2055_vm0, %v2053_v18, %v2057_v59  ;;  %vm2069_vm2 = vcmp.ge.f32.partialorder %v2067_v13, 0.0  ;;  %v2071_v10 = vmul.f32 0.01, %v2067_v13 }
 0x4ca   : > { %2195 = vst [vmem:[%s3510_s14 + $0x58] sm:$0xff] %v2045_v41  ;;  %v2072_v14 = vsel %vm2068_vm1, %v2066_v51, %v2070_v15 }
 0x4cb   : > { %2198 = vst [vmem:[%s3510_s14 + $0x60] sm:$0xff] %v2058_v50  ;;  %v2073_v33 = vsel %vm2069_vm2, %v2067_v13, %v2071_v10 }
 0x4cc   : > { %2199 = vst [vmem:[%s3510_s14 + $0x68] sm:$0xff] %v2059_v26 }
 0x4cd   : > { %2202 = vst [vmem:[%s3510_s14 + $0x70] sm:$0xff] %v2072_v14 }
 0x4ce   : > { %2203 = vst [vmem:[%s3510_s14 + $0x78] sm:$0xff] %v2073_v33 }
 0x4cf PF: > { %s13_s12 = sadd.s32 1, %s2700_s12  }
 0x4d0   : > { %p10_p4 = scmp.ge.s32.totalorder %s13_s12, 4  }
 0x4d2   :  { %12 = sbr.rel (!%p10_p4) target bundleno = 1 (0x1), region = 76 }

</bundles_post_ra>
